<compile_context>
chip_gen: v6e
topology: v6e:2x2x1
jax: 0.10.0
libtpu: 0.0.40
codegen_flags: <defaults>
</compile_context>

<pallas_src>
import functools

import numpy as np
import jax
import jax.numpy as jnp
from jax import lax
from jax.experimental import pallas as pl
from jax.experimental.pallas import tpu as pltpu

BN_EPS = 1e-5


# ----------------------------------------------------------------------------
# Trace-time constants
# ----------------------------------------------------------------------------

@functools.lru_cache(maxsize=None)
def _w_masks(H, W, K):
    """Per-kw validity masks for the depthwise taps, shape (K, H*W, 1).

    mask[kw, p] = 1 iff column (p % W) + (kw - K//2) is inside [0, W).
    The H-direction boundary is handled by zero halo rows in the VMEM scratch.
    """
    pad = K // 2
    HW = H * W
    m = np.zeros((K, HW, 1), np.float32)
    for kw in range(K):
        dw = kw - pad
        for p in range(HW):
            w = p % W
            m[kw, p, 0] = 1.0 if 0 <= w + dw < W else 0.0
    return m


# ----------------------------------------------------------------------------
# Fused kernel
# ----------------------------------------------------------------------------

def _make_kernel(H, W, K, use_res):
    HW = H * W
    pad = K // 2
    halo = pad * W + pad                 # largest |flat shift| of a tap
    B = ((halo + 7) // 8) * 8            # 8-aligned halo rows on each side
    R = 2 * B + HW                       # total scratch rows

    def kernel(x_ref, wpw_ref, s1_ref, b1_ref,
               wdw_ref, sd_ref, bd_ref, wm_ref,
               wse1_ref, bse1_ref, wse2_ref, bse2_ref,
               wpw1_ref, s2_ref, b2_ref,
               o_ref, scr_ref):
        x = x_ref[0]                                               # (HW, Cin)
        cmid = wpw_ref.shape[1]

        # ---- point_wise: 1x1 conv + folded BN + ReLU6 -----------------------
        y = jnp.dot(x, wpw_ref[...], preferred_element_type=jnp.float32)
        y = jnp.clip(y * s1_ref[...] + b1_ref[...], 0.0, 6.0)      # (HW, Cmid)

        # ---- depthwise KxK (stride 1, SAME) + folded BN + ReLU6 -------------
        # Zero-padded flat image in VMEM: rows [B, B+HW) hold y, halo rows = 0.
        scr_ref[...] = jnp.zeros((R, cmid), jnp.float32)
        scr_ref[B:B + HW, :] = y
        yp = scr_ref[...]                                          # (R, Cmid)
        wdw = wdw_ref[...]                                         # (K, K, Cmid)
        wm = wm_ref[...]                                           # (K, HW, 1)
        acc = jnp.zeros_like(y)
        for kh in range(K):
            for kw in range(K):
                d = (kh - pad) * W + (kw - pad)
                shifted = yp[B + d:B + d + HW, :]                  # (HW, Cmid)
                acc = acc + shifted * wdw[kh, kw, :] * wm[kw]
        y = jnp.clip(acc * sd_ref[...] + bd_ref[...], 0.0, 6.0)    # (HW, Cmid)

        # ---- SE: global avg pool -> FC -> ReLU -> FC -> sigmoid -> scale ----
        pooled = jnp.mean(y, axis=0, keepdims=True)                # (1, Cmid)
        h = jnp.maximum(
            jnp.dot(pooled, wse1_ref[...], preferred_element_type=jnp.float32)
            + bse1_ref[...], 0.0)                                  # (1, se_mid)
        gate = jax.nn.sigmoid(
            jnp.dot(h, wse2_ref[...], preferred_element_type=jnp.float32)
            + bse2_ref[...])                                       # (1, Cmid)
        y = y * gate

        # ---- point_wise_1: 1x1 conv + folded BN (no act) + residual ---------
        out = jnp.dot(y, wpw1_ref[...], preferred_element_type=jnp.float32)
        out = out * s2_ref[...] + b2_ref[...]
        if use_res:
            out = out + x
        o_ref[0] = out.astype(o_ref.dtype)

    return kernel, B


# ----------------------------------------------------------------------------
# Parameters (deterministic, synthetic) and forward wrapper
# ----------------------------------------------------------------------------

def _fold_bn(gamma, beta, mean, var):
    scale = gamma / jnp.sqrt(var + BN_EPS)
    bias = beta - mean * scale
    return scale[None, :], bias[None, :]            # kernel-ready (1, C)


def make_params(key, cin, cout, cmid, K):
    ks = jax.random.split(key, 10)

    def bn(k, c):
        k1, k2, k3, k4 = jax.random.split(k, 4)
        gamma = jax.random.uniform(k1, (c,), jnp.float32, 0.5, 1.5)
        beta = 0.1 * jax.random.normal(k2, (c,), jnp.float32)
        mean = 0.1 * jax.random.normal(k3, (c,), jnp.float32)
        var = jax.random.uniform(k4, (c,), jnp.float32, 0.5, 1.5)
        return _fold_bn(gamma, beta, mean, var)

    se_mid = max(cmid // 4, 8)
    p = {}
    p["pw_w"] = 0.2 * jax.random.normal(ks[0], (cin, cmid), jnp.float32)
    p["pw_scale"], p["pw_bias"] = bn(ks[1], cmid)
    p["dw_w"] = 0.2 * jax.random.normal(ks[2], (K, K, cmid), jnp.float32)
    p["dw_scale"], p["dw_bias"] = bn(ks[3], cmid)
    p["se_w1"] = 0.2 * jax.random.normal(ks[4], (cmid, se_mid), jnp.float32)
    p["se_b1"] = 0.1 * jax.random.normal(ks[5], (1, se_mid), jnp.float32)
    p["se_w2"] = 0.2 * jax.random.normal(ks[6], (se_mid, cmid), jnp.float32)
    p["se_b2"] = 0.1 * jax.random.normal(ks[7], (1, cmid), jnp.float32)
    p["pw1_w"] = 0.2 * jax.random.normal(ks[8], (cmid, cout), jnp.float32)
    p["pw1_scale"], p["pw1_bias"] = bn(ks[9], cout)
    return p


@functools.partial(jax.jit, static_argnames=("K",))
def poblock_forward(x_nchw, params, K=3):
    """POBlock forward (MBConv, stride=1, se=True). Input/output NCHW."""
    N, Cin, H, W = x_nchw.shape
    HW = H * W
    Cmid = params["pw_w"].shape[1]
    Cout = params["pw1_w"].shape[1]
    se_mid = params["se_w1"].shape[1]
    use_res = (Cin == Cout)  # stride == 1 in this config
    # TODO(synk): stride != 1 and the input_depth == mid_depth (identity
    # point_wise) variants of MBConv are not implemented.

    x_nhwc = jnp.transpose(x_nchw, (0, 2, 3, 1)).astype(jnp.float32)
    x_flat = x_nhwc.reshape(N, HW, Cin)
    wmask = jnp.asarray(_w_masks(H, W, K))          # trace-time constant

    kernel, B = _make_kernel(H, W, K, use_res)
    R = 2 * B + HW

    out_flat = pl.pallas_call(
        kernel,
        out_shape=jax.ShapeDtypeStruct((N, HW, Cout), jnp.float32),
        grid_spec=pltpu.PrefetchScalarGridSpec(
            num_scalar_prefetch=0,
            grid=(N,),
            in_specs=[
                pl.BlockSpec((1, HW, Cin), lambda n: (n, 0, 0)),     # x
                pl.BlockSpec((Cin, Cmid), lambda n: (0, 0)),         # pw_w
                pl.BlockSpec((1, Cmid), lambda n: (0, 0)),           # pw_scale
                pl.BlockSpec((1, Cmid), lambda n: (0, 0)),           # pw_bias
                pl.BlockSpec((K, K, Cmid), lambda n: (0, 0, 0)),     # dw_w
                pl.BlockSpec((1, Cmid), lambda n: (0, 0)),           # dw_scale
                pl.BlockSpec((1, Cmid), lambda n: (0, 0)),           # dw_bias
                pl.BlockSpec((K, HW, 1), lambda n: (0, 0, 0)),       # wmask
                pl.BlockSpec((Cmid, se_mid), lambda n: (0, 0)),      # se_w1
                pl.BlockSpec((1, se_mid), lambda n: (0, 0)),         # se_b1
                pl.BlockSpec((se_mid, Cmid), lambda n: (0, 0)),      # se_w2
                pl.BlockSpec((1, Cmid), lambda n: (0, 0)),           # se_b2
                pl.BlockSpec((Cmid, Cout), lambda n: (0, 0)),        # pw1_w
                pl.BlockSpec((1, Cout), lambda n: (0, 0)),           # pw1_scale
                pl.BlockSpec((1, Cout), lambda n: (0, 0)),           # pw1_bias
            ],
            out_specs=pl.BlockSpec((1, HW, Cout), lambda n: (n, 0, 0)),
            scratch_shapes=[pltpu.VMEM((R, Cmid), jnp.float32)],
        ),
        compiler_params=pltpu.CompilerParams(
            dimension_semantics=("parallel",)),
    )(x_flat, params["pw_w"], params["pw_scale"], params["pw_bias"],
      params["dw_w"], params["dw_scale"], params["dw_bias"], wmask,
      params["se_w1"], params["se_b1"], params["se_w2"], params["se_b2"],
      params["pw1_w"], params["pw1_scale"], params["pw1_bias"])

    out_nhwc = out_flat.reshape(N, H, W, Cout)
    return jnp.transpose(out_nhwc, (0, 3, 1, 2))    # back to NCHW


# ----------------------------------------------------------------------------
# Pure-JAX reference (correctness check)
# ----------------------------------------------------------------------------

def poblock_reference(x_nchw, params, K=3):
    relu6 = lambda v: jnp.clip(v, 0.0, 6.0)
    N, Cin, H, W = x_nchw.shape
    x = jnp.transpose(x_nchw, (0, 2, 3, 1)).astype(jnp.float32)  # NHWC
    y = relu6(jnp.einsum("nhwc,cd->nhwd", x, params["pw_w"])
              * params["pw_scale"] + params["pw_bias"])
    cmid = y.shape[-1]
    w_dw = params["dw_w"][:, :, None, :]  # HWIO with I=1
    y = lax.conv_general_dilated(
        y, w_dw, window_strides=(1, 1), padding="SAME",
        dimension_numbers=("NHWC", "HWIO", "NHWC"), feature_group_count=cmid)
    y = relu6(y * params["dw_scale"] + params["dw_bias"])
    p = jnp.mean(y, axis=(1, 2))
    h = jnp.maximum(p @ params["se_w1"] + params["se_b1"], 0.0)
    s = jax.nn.sigmoid(h @ params["se_w2"] + params["se_b2"])
    y = y * s[:, None, None, :]
    out = (jnp.einsum("nhwc,cd->nhwd", y, params["pw1_w"])
           * params["pw1_scale"] + params["pw1_bias"])
    if Cin == params["pw1_w"].shape[1]:
        out = out + x
    return jnp.transpose(out, (0, 3, 1, 2))


# ----------------------------------------------------------------------------

if __name__ == "__main__":
    N, Cin, H, W = 2, 16, 8, 8
    Cout, expansion, K = 16, 4, 3
    Cmid = Cin * expansion

    key = jax.random.PRNGKey(0)
    kx, kp = jax.random.split(key)
    x = jax.random.normal(kx, (N, Cin, H, W), jnp.float32)  # NCHW like PyTorch
    params = make_params(kp, Cin, Cout, Cmid, K)

    out = poblock_forward(x, params, K=K)
    out = jax.block_until_ready(out)

    ref = poblock_reference(x, params, K=K)
    assert out.shape == (N, Cout, H, W), out.shape
    assert jnp.allclose(out, ref, atol=1e-4, rtol=1e-4), float(
        jnp.max(jnp.abs(out - ref)))

    print("KERNEL_OK")
</pallas_src>

<mosaic_0001>
module attributes {stable_mosaic.version = 11 : i64} {
  func.func @kernel(%arg0: i32, %arg1: memref<1x64x16xf32, #tpu.memory_space<vmem>>, %arg2: memref<16x64xf32, #tpu.memory_space<vmem>>, %arg3: memref<1x64xf32, #tpu.memory_space<vmem>>, %arg4: memref<1x64xf32, #tpu.memory_space<vmem>>, %arg5: memref<3x3x64xf32, #tpu.memory_space<vmem>>, %arg6: memref<1x64xf32, #tpu.memory_space<vmem>>, %arg7: memref<1x64xf32, #tpu.memory_space<vmem>>, %arg8: memref<3x64x1xf32, #tpu.memory_space<vmem>>, %arg9: memref<64x16xf32, #tpu.memory_space<vmem>>, %arg10: memref<1x16xf32, #tpu.memory_space<vmem>>, %arg11: memref<16x64xf32, #tpu.memory_space<vmem>>, %arg12: memref<1x64xf32, #tpu.memory_space<vmem>>, %arg13: memref<64x16xf32, #tpu.memory_space<vmem>>, %arg14: memref<1x16xf32, #tpu.memory_space<vmem>>, %arg15: memref<1x16xf32, #tpu.memory_space<vmem>>, %arg16: memref<1x64x16xf32, #tpu.memory_space<vmem>>, %arg17: memref<96x64xf32, #tpu.memory_space<vmem>>) attributes {dimension_semantics = [#tpu.dimension_semantics<parallel>], iteration_bounds = array<i64: 2>, scalar_prefetch = 0 : i64, scratch_operands = 1 : i64, tpu.core_type = #tpu.core_type<tc>, window_params = [{transform_indices = @transform_0, window_bounds = array<i64: 1, 64, 16>}, {pipeline_mode = #tpu.pipeline_mode<synchronous>, transform_indices = @transform_1, window_bounds = array<i64: 16, 64>}, {pipeline_mode = #tpu.pipeline_mode<synchronous>, transform_indices = @transform_2, window_bounds = array<i64: 1, 64>}, {pipeline_mode = #tpu.pipeline_mode<synchronous>, transform_indices = @transform_3, window_bounds = array<i64: 1, 64>}, {pipeline_mode = #tpu.pipeline_mode<synchronous>, transform_indices = @transform_4, window_bounds = array<i64: 3, 3, 64>}, {pipeline_mode = #tpu.pipeline_mode<synchronous>, transform_indices = @transform_5, window_bounds = array<i64: 1, 64>}, {pipeline_mode = #tpu.pipeline_mode<synchronous>, transform_indices = @transform_6, window_bounds = array<i64: 1, 64>}, {pipeline_mode = #tpu.pipeline_mode<synchronous>, transform_indices = @transform_7, window_bounds = array<i64: 3, 64, 1>}, {pipeline_mode = #tpu.pipeline_mode<synchronous>, transform_indices = @transform_8, window_bounds = array<i64: 64, 16>}, {pipeline_mode = #tpu.pipeline_mode<synchronous>, transform_indices = @transform_9, window_bounds = array<i64: 1, 16>}, {pipeline_mode = #tpu.pipeline_mode<synchronous>, transform_indices = @transform_10, window_bounds = array<i64: 16, 64>}, {pipeline_mode = #tpu.pipeline_mode<synchronous>, transform_indices = @transform_11, window_bounds = array<i64: 1, 64>}, {pipeline_mode = #tpu.pipeline_mode<synchronous>, transform_indices = @transform_12, window_bounds = array<i64: 64, 16>}, {pipeline_mode = #tpu.pipeline_mode<synchronous>, transform_indices = @transform_13, window_bounds = array<i64: 1, 16>}, {pipeline_mode = #tpu.pipeline_mode<synchronous>, transform_indices = @transform_14, window_bounds = array<i64: 1, 16>}, {transform_indices = @transform_15, window_bounds = array<i64: 1, 64, 16>}]} {
    %c0 = arith.constant 0 : index
    %c0_0 = arith.constant 0 : index
    %c0_1 = arith.constant 0 : index
    %0 = vector.load %arg1[%c0, %c0_0, %c0_1] : memref<1x64x16xf32, #tpu.memory_space<vmem>>, vector<1x64x16xf32>
    %1 = vector.shape_cast %0 : vector<1x64x16xf32> to vector<64x16xf32>
    %c0_2 = arith.constant 0 : index
    %c0_3 = arith.constant 0 : index
    %2 = vector.load %arg2[%c0_2, %c0_3] : memref<16x64xf32, #tpu.memory_space<vmem>>, vector<16x64xf32>
    %cst = arith.constant dense<0.000000e+00> : vector<64x64xf32>
    %3 = tpu.matmul %1, %2, %cst {dimension_numbers = #tpu.dot_dimension_numbers<[1], [0], [0], [1], [0, 0, 1, 1], [], []>} : vector<64x16xf32>, vector<16x64xf32>, vector<64x64xf32> -> vector<64x64xf32>
    %c0_4 = arith.constant 0 : index
    %c0_5 = arith.constant 0 : index
    %4 = vector.load %arg3[%c0_4, %c0_5] : memref<1x64xf32, #tpu.memory_space<vmem>>, vector<1x64xf32>
    %5 = vector.broadcast %4 : vector<1x64xf32> to vector<64x64xf32>
    %6 = arith.mulf %3, %5 : vector<64x64xf32>
    %c0_6 = arith.constant 0 : index
    %c0_7 = arith.constant 0 : index
    %7 = vector.load %arg4[%c0_6, %c0_7] : memref<1x64xf32, #tpu.memory_space<vmem>>, vector<1x64xf32>
    %8 = vector.broadcast %7 : vector<1x64xf32> to vector<64x64xf32>
    %9 = arith.addf %6, %8 : vector<64x64xf32>
    %cst_8 = arith.constant 0.000000e+00 : f32
    %cst_9 = arith.constant 6.000000e+00 : f32
    %10 = vector.broadcast %cst_8 : f32 to vector<64x64xf32>
    %11 = arith.maximumf %10, %9 : vector<64x64xf32>
    %12 = vector.broadcast %cst_9 : f32 to vector<64x64xf32>
    %13 = arith.minimumf %12, %11 : vector<64x64xf32>
    %cst_10 = arith.constant 0.000000e+00 : f32
    %14 = vector.broadcast %cst_10 : f32 to vector<96x64xf32>
    %c0_11 = arith.constant 0 : index
    %c0_12 = arith.constant 0 : index
    %15 = vector.load %arg17[%c0_11, %c0_12] : memref<96x64xf32, #tpu.memory_space<vmem>>, vector<96x64xf32>
    tpu.vector_store %arg17[%c0_11, %c0_12], %14 {strides = array<i32>} : memref<96x64xf32, #tpu.memory_space<vmem>>, vector<96x64xf32>,
    %c16 = arith.constant 16 : index
    %c0_13 = arith.constant 0 : index
    %16 = vector.load %arg17[%c16, %c0_13] : memref<96x64xf32, #tpu.memory_space<vmem>>, vector<64x64xf32>
    tpu.vector_store %arg17[%c16, %c0_13], %13 {strides = array<i32>} : memref<96x64xf32, #tpu.memory_space<vmem>>, vector<64x64xf32>,
    %c0_14 = arith.constant 0 : index
    %c0_15 = arith.constant 0 : index
    %17 = vector.load %arg17[%c0_14, %c0_15] : memref<96x64xf32, #tpu.memory_space<vmem>>, vector<96x64xf32>
    %c0_16 = arith.constant 0 : index
    %c0_17 = arith.constant 0 : index
    %c0_18 = arith.constant 0 : index
    %18 = vector.load %arg5[%c0_16, %c0_17, %c0_18] : memref<3x3x64xf32, #tpu.memory_space<vmem>>, vector<3x3x64xf32>
    %c0_19 = arith.constant 0 : index
    %c0_20 = arith.constant 0 : index
    %c0_21 = arith.constant 0 : index
    %19 = vector.load %arg8[%c0_19, %c0_20, %c0_21] : memref<3x64x1xf32, #tpu.memory_space<vmem>>, vector<3x64x1xf32>
    %cst_22 = arith.constant 0.000000e+00 : f32
    %20 = vector.broadcast %cst_22 : f32 to vector<64x64xf32>
    %21 = vector.extract_strided_slice %17 {offsets = [7, 0], sizes = [64, 64], strides = [1, 1]} : vector<96x64xf32> to vector<64x64xf32>
    %22 = vector.extract_strided_slice %18 {offsets = [0, 0, 0], sizes = [1, 1, 64], strides = [1, 1, 1]} : vector<3x3x64xf32> to vector<1x1x64xf32>
    %23 = vector.shape_cast %22 : vector<1x1x64xf32> to vector<64xf32>
    %24 = vector.shape_cast %23 : vector<64xf32> to vector<1x64xf32>
    %25 = vector.broadcast %24 : vector<1x64xf32> to vector<64x64xf32>
    %26 = arith.mulf %21, %25 : vector<64x64xf32>
    %27 = vector.extract_strided_slice %19 {offsets = [0, 0, 0], sizes = [1, 64, 1], strides = [1, 1, 1]} : vector<3x64x1xf32> to vector<1x64x1xf32>
    %28 = vector.shape_cast %27 : vector<1x64x1xf32> to vector<64x1xf32>
    %29 = vector.broadcast %28 : vector<64x1xf32> to vector<64x64xf32>
    %30 = arith.mulf %26, %29 : vector<64x64xf32>
    %31 = arith.addf %20, %30 : vector<64x64xf32>
    %32 = vector.extract_strided_slice %17 {offsets = [8, 0], sizes = [64, 64], strides = [1, 1]} : vector<96x64xf32> to vector<64x64xf32>
    %33 = vector.extract_strided_slice %18 {offsets = [0, 1, 0], sizes = [1, 1, 64], strides = [1, 1, 1]} : vector<3x3x64xf32> to vector<1x1x64xf32>
    %34 = vector.shape_cast %33 : vector<1x1x64xf32> to vector<64xf32>
    %35 = vector.shape_cast %34 : vector<64xf32> to vector<1x64xf32>
    %36 = vector.broadcast %35 : vector<1x64xf32> to vector<64x64xf32>
    %37 = arith.mulf %32, %36 : vector<64x64xf32>
    %38 = vector.extract_strided_slice %19 {offsets = [1, 0, 0], sizes = [1, 64, 1], strides = [1, 1, 1]} : vector<3x64x1xf32> to vector<1x64x1xf32>
    %39 = vector.shape_cast %38 : vector<1x64x1xf32> to vector<64x1xf32>
    %40 = vector.broadcast %39 : vector<64x1xf32> to vector<64x64xf32>
    %41 = arith.mulf %37, %40 : vector<64x64xf32>
    %42 = arith.addf %31, %41 : vector<64x64xf32>
    %43 = vector.extract_strided_slice %17 {offsets = [9, 0], sizes = [64, 64], strides = [1, 1]} : vector<96x64xf32> to vector<64x64xf32>
    %44 = vector.extract_strided_slice %18 {offsets = [0, 2, 0], sizes = [1, 1, 64], strides = [1, 1, 1]} : vector<3x3x64xf32> to vector<1x1x64xf32>
    %45 = vector.shape_cast %44 : vector<1x1x64xf32> to vector<64xf32>
    %46 = vector.shape_cast %45 : vector<64xf32> to vector<1x64xf32>
    %47 = vector.broadcast %46 : vector<1x64xf32> to vector<64x64xf32>
    %48 = arith.mulf %43, %47 : vector<64x64xf32>
    %49 = vector.extract_strided_slice %19 {offsets = [2, 0, 0], sizes = [1, 64, 1], strides = [1, 1, 1]} : vector<3x64x1xf32> to vector<1x64x1xf32>
    %50 = vector.shape_cast %49 : vector<1x64x1xf32> to vector<64x1xf32>
    %51 = vector.broadcast %50 : vector<64x1xf32> to vector<64x64xf32>
    %52 = arith.mulf %48, %51 : vector<64x64xf32>
    %53 = arith.addf %42, %52 : vector<64x64xf32>
    %54 = vector.extract_strided_slice %17 {offsets = [15, 0], sizes = [64, 64], strides = [1, 1]} : vector<96x64xf32> to vector<64x64xf32>
    %55 = vector.extract_strided_slice %18 {offsets = [1, 0, 0], sizes = [1, 1, 64], strides = [1, 1, 1]} : vector<3x3x64xf32> to vector<1x1x64xf32>
    %56 = vector.shape_cast %55 : vector<1x1x64xf32> to vector<64xf32>
    %57 = vector.shape_cast %56 : vector<64xf32> to vector<1x64xf32>
    %58 = vector.broadcast %57 : vector<1x64xf32> to vector<64x64xf32>
    %59 = arith.mulf %54, %58 : vector<64x64xf32>
    %60 = vector.extract_strided_slice %19 {offsets = [0, 0, 0], sizes = [1, 64, 1], strides = [1, 1, 1]} : vector<3x64x1xf32> to vector<1x64x1xf32>
    %61 = vector.shape_cast %60 : vector<1x64x1xf32> to vector<64x1xf32>
    %62 = vector.broadcast %61 : vector<64x1xf32> to vector<64x64xf32>
    %63 = arith.mulf %59, %62 : vector<64x64xf32>
    %64 = arith.addf %53, %63 : vector<64x64xf32>
    %65 = vector.extract_strided_slice %17 {offsets = [16, 0], sizes = [64, 64], strides = [1, 1]} : vector<96x64xf32> to vector<64x64xf32>
    %66 = vector.extract_strided_slice %18 {offsets = [1, 1, 0], sizes = [1, 1, 64], strides = [1, 1, 1]} : vector<3x3x64xf32> to vector<1x1x64xf32>
    %67 = vector.shape_cast %66 : vector<1x1x64xf32> to vector<64xf32>
    %68 = vector.shape_cast %67 : vector<64xf32> to vector<1x64xf32>
    %69 = vector.broadcast %68 : vector<1x64xf32> to vector<64x64xf32>
    %70 = arith.mulf %65, %69 : vector<64x64xf32>
    %71 = vector.extract_strided_slice %19 {offsets = [1, 0, 0], sizes = [1, 64, 1], strides = [1, 1, 1]} : vector<3x64x1xf32> to vector<1x64x1xf32>
    %72 = vector.shape_cast %71 : vector<1x64x1xf32> to vector<64x1xf32>
    %73 = vector.broadcast %72 : vector<64x1xf32> to vector<64x64xf32>
    %74 = arith.mulf %70, %73 : vector<64x64xf32>
    %75 = arith.addf %64, %74 : vector<64x64xf32>
    %76 = vector.extract_strided_slice %17 {offsets = [17, 0], sizes = [64, 64], strides = [1, 1]} : vector<96x64xf32> to vector<64x64xf32>
    %77 = vector.extract_strided_slice %18 {offsets = [1, 2, 0], sizes = [1, 1, 64], strides = [1, 1, 1]} : vector<3x3x64xf32> to vector<1x1x64xf32>
    %78 = vector.shape_cast %77 : vector<1x1x64xf32> to vector<64xf32>
    %79 = vector.shape_cast %78 : vector<64xf32> to vector<1x64xf32>
    %80 = vector.broadcast %79 : vector<1x64xf32> to vector<64x64xf32>
    %81 = arith.mulf %76, %80 : vector<64x64xf32>
    %82 = vector.extract_strided_slice %19 {offsets = [2, 0, 0], sizes = [1, 64, 1], strides = [1, 1, 1]} : vector<3x64x1xf32> to vector<1x64x1xf32>
    %83 = vector.shape_cast %82 : vector<1x64x1xf32> to vector<64x1xf32>
    %84 = vector.broadcast %83 : vector<64x1xf32> to vector<64x64xf32>
    %85 = arith.mulf %81, %84 : vector<64x64xf32>
    %86 = arith.addf %75, %85 : vector<64x64xf32>
    %87 = vector.extract_strided_slice %17 {offsets = [23, 0], sizes = [64, 64], strides = [1, 1]} : vector<96x64xf32> to vector<64x64xf32>
    %88 = vector.extract_strided_slice %18 {offsets = [2, 0, 0], sizes = [1, 1, 64], strides = [1, 1, 1]} : vector<3x3x64xf32> to vector<1x1x64xf32>
    %89 = vector.shape_cast %88 : vector<1x1x64xf32> to vector<64xf32>
    %90 = vector.shape_cast %89 : vector<64xf32> to vector<1x64xf32>
    %91 = vector.broadcast %90 : vector<1x64xf32> to vector<64x64xf32>
    %92 = arith.mulf %87, %91 : vector<64x64xf32>
    %93 = vector.extract_strided_slice %19 {offsets = [0, 0, 0], sizes = [1, 64, 1], strides = [1, 1, 1]} : vector<3x64x1xf32> to vector<1x64x1xf32>
    %94 = vector.shape_cast %93 : vector<1x64x1xf32> to vector<64x1xf32>
    %95 = vector.broadcast %94 : vector<64x1xf32> to vector<64x64xf32>
    %96 = arith.mulf %92, %95 : vector<64x64xf32>
    %97 = arith.addf %86, %96 : vector<64x64xf32>
    %98 = vector.extract_strided_slice %17 {offsets = [24, 0], sizes = [64, 64], strides = [1, 1]} : vector<96x64xf32> to vector<64x64xf32>
    %99 = vector.extract_strided_slice %18 {offsets = [2, 1, 0], sizes = [1, 1, 64], strides = [1, 1, 1]} : vector<3x3x64xf32> to vector<1x1x64xf32>
    %100 = vector.shape_cast %99 : vector<1x1x64xf32> to vector<64xf32>
    %101 = vector.shape_cast %100 : vector<64xf32> to vector<1x64xf32>
    %102 = vector.broadcast %101 : vector<1x64xf32> to vector<64x64xf32>
    %103 = arith.mulf %98, %102 : vector<64x64xf32>
    %104 = vector.extract_strided_slice %19 {offsets = [1, 0, 0], sizes = [1, 64, 1], strides = [1, 1, 1]} : vector<3x64x1xf32> to vector<1x64x1xf32>
    %105 = vector.shape_cast %104 : vector<1x64x1xf32> to vector<64x1xf32>
    %106 = vector.broadcast %105 : vector<64x1xf32> to vector<64x64xf32>
    %107 = arith.mulf %103, %106 : vector<64x64xf32>
    %108 = arith.addf %97, %107 : vector<64x64xf32>
    %109 = vector.extract_strided_slice %17 {offsets = [25, 0], sizes = [64, 64], strides = [1, 1]} : vector<96x64xf32> to vector<64x64xf32>
    %110 = vector.extract_strided_slice %18 {offsets = [2, 2, 0], sizes = [1, 1, 64], strides = [1, 1, 1]} : vector<3x3x64xf32> to vector<1x1x64xf32>
    %111 = vector.shape_cast %110 : vector<1x1x64xf32> to vector<64xf32>
    %112 = vector.shape_cast %111 : vector<64xf32> to vector<1x64xf32>
    %113 = vector.broadcast %112 : vector<1x64xf32> to vector<64x64xf32>
    %114 = arith.mulf %109, %113 : vector<64x64xf32>
    %115 = vector.extract_strided_slice %19 {offsets = [2, 0, 0], sizes = [1, 64, 1], strides = [1, 1, 1]} : vector<3x64x1xf32> to vector<1x64x1xf32>
    %116 = vector.shape_cast %115 : vector<1x64x1xf32> to vector<64x1xf32>
    %117 = vector.broadcast %116 : vector<64x1xf32> to vector<64x64xf32>
    %118 = arith.mulf %114, %117 : vector<64x64xf32>
    %119 = arith.addf %108, %118 : vector<64x64xf32>
    %c0_23 = arith.constant 0 : index
    %c0_24 = arith.constant 0 : index
    %120 = vector.load %arg6[%c0_23, %c0_24] : memref<1x64xf32, #tpu.memory_space<vmem>>, vector<1x64xf32>
    %121 = vector.broadcast %120 : vector<1x64xf32> to vector<64x64xf32>
    %122 = arith.mulf %119, %121 : vector<64x64xf32>
    %c0_25 = arith.constant 0 : index
    %c0_26 = arith.constant 0 : index
    %123 = vector.load %arg7[%c0_25, %c0_26] : memref<1x64xf32, #tpu.memory_space<vmem>>, vector<1x64xf32>
    %124 = vector.broadcast %123 : vector<1x64xf32> to vector<64x64xf32>
    %125 = arith.addf %122, %124 : vector<64x64xf32>
    %cst_27 = arith.constant 0.000000e+00 : f32
    %cst_28 = arith.constant 6.000000e+00 : f32
    %126 = vector.broadcast %cst_27 : f32 to vector<64x64xf32>
    %127 = arith.maximumf %126, %125 : vector<64x64xf32>
    %128 = vector.broadcast %cst_28 : f32 to vector<64x64xf32>
    %129 = arith.minimumf %128, %127 : vector<64x64xf32>
    %cst_29 = arith.constant dense<0.000000e+00> : vector<64xf32>
    %130 = vector.multi_reduction <add>, %129, %cst_29 [0] : vector<64x64xf32> to vector<64xf32>
    %131 = vector.shape_cast %130 : vector<64xf32> to vector<1x64xf32>
    %cst_30 = arith.constant 6.400000e+01 : f32
    %132 = vector.broadcast %cst_30 : f32 to vector<1x64xf32>
    %133 = arith.divf %131, %132 : vector<1x64xf32>
    %c0_31 = arith.constant 0 : index
    %c0_32 = arith.constant 0 : index
    %134 = vector.load %arg9[%c0_31, %c0_32] : memref<64x16xf32, #tpu.memory_space<vmem>>, vector<64x16xf32>
    %cst_33 = arith.constant dense<0.000000e+00> : vector<1x16xf32>
    %135 = tpu.matmul %133, %134, %cst_33 {dimension_numbers = #tpu.dot_dimension_numbers<[1], [0], [0], [1], [0, 0, 1, 1], [], []>} : vector<1x64xf32>, vector<64x16xf32>, vector<1x16xf32> -> vector<1x16xf32>
    %c0_34 = arith.constant 0 : index
    %c0_35 = arith.constant 0 : index
    %136 = vector.load %arg10[%c0_34, %c0_35] : memref<1x16xf32, #tpu.memory_space<vmem>>, vector<1x16xf32>
    %137 = arith.addf %135, %136 : vector<1x16xf32>
    %cst_36 = arith.constant 0.000000e+00 : f32
    %138 = vector.broadcast %cst_36 : f32 to vector<1x16xf32>
    %139 = arith.maximumf %137, %138 : vector<1x16xf32>
    %c0_37 = arith.constant 0 : index
    %c0_38 = arith.constant 0 : index
    %140 = vector.load %arg11[%c0_37, %c0_38] : memref<16x64xf32, #tpu.memory_space<vmem>>, vector<16x64xf32>
    %cst_39 = arith.constant dense<0.000000e+00> : vector<1x64xf32>
    %141 = tpu.matmul %139, %140, %cst_39 {dimension_numbers = #tpu.dot_dimension_numbers<[1], [0], [0], [1], [0, 0, 1, 1], [], []>} : vector<1x16xf32>, vector<16x64xf32>, vector<1x64xf32> -> vector<1x64xf32>
    %c0_40 = arith.constant 0 : index
    %c0_41 = arith.constant 0 : index
    %142 = vector.load %arg12[%c0_40, %c0_41] : memref<1x64xf32, #tpu.memory_space<vmem>>, vector<1x64xf32>
    %143 = arith.addf %141, %142 : vector<1x64xf32>
    %144 = arith.negf %143 : vector<1x64xf32>
    %145 = math.exp %144 : vector<1x64xf32>
    %cst_42 = arith.constant 1.000000e+00 : f32
    %146 = vector.broadcast %cst_42 : f32 to vector<1x64xf32>
    %147 = arith.addf %146, %145 : vector<1x64xf32>
    %148 = arith.divf %146, %147 : vector<1x64xf32>
    %149 = vector.broadcast %148 : vector<1x64xf32> to vector<64x64xf32>
    %150 = arith.mulf %129, %149 : vector<64x64xf32>
    %c0_43 = arith.constant 0 : index
    %c0_44 = arith.constant 0 : index
    %151 = vector.load %arg13[%c0_43, %c0_44] : memref<64x16xf32, #tpu.memory_space<vmem>>, vector<64x16xf32>
    %cst_45 = arith.constant dense<0.000000e+00> : vector<64x16xf32>
    %152 = tpu.matmul %150, %151, %cst_45 {dimension_numbers = #tpu.dot_dimension_numbers<[1], [0], [0], [1], [0, 0, 1, 1], [], []>} : vector<64x64xf32>, vector<64x16xf32>, vector<64x16xf32> -> vector<64x16xf32>
    %c0_46 = arith.constant 0 : index
    %c0_47 = arith.constant 0 : index
    %153 = vector.load %arg14[%c0_46, %c0_47] : memref<1x16xf32, #tpu.memory_space<vmem>>, vector<1x16xf32>
    %154 = vector.broadcast %153 : vector<1x16xf32> to vector<64x16xf32>
    %155 = arith.mulf %152, %154 : vector<64x16xf32>
    %c0_48 = arith.constant 0 : index
    %c0_49 = arith.constant 0 : index
    %156 = vector.load %arg15[%c0_48, %c0_49] : memref<1x16xf32, #tpu.memory_space<vmem>>, vector<1x16xf32>
    %157 = vector.broadcast %156 : vector<1x16xf32> to vector<64x16xf32>
    %158 = arith.addf %155, %157 : vector<64x16xf32>
    %159 = arith.addf %158, %1 : vector<64x16xf32>
    %c0_50 = arith.constant 0 : index
    %c0_51 = arith.constant 0 : index
    %c0_52 = arith.constant 0 : index
    %160 = vector.load %arg16[%c0_50, %c0_51, %c0_52] : memref<1x64x16xf32, #tpu.memory_space<vmem>>, vector<1x64x16xf32>
    %161 = vector.shape_cast %160 : vector<1x64x16xf32> to vector<64x16xf32>
    %162 = vector.shape_cast %159 : vector<64x16xf32> to vector<1x64x16xf32>
    tpu.vector_store %arg16[%c0_50, %c0_51, %c0_52], %162 {strides = array<i32>} : memref<1x64x16xf32, #tpu.memory_space<vmem>>, vector<1x64x16xf32>,
    return
  }
  func.func @transform_0(%arg0: i32) -> (i32, i32, i32) {
    %c0_i32 = arith.constant 0 : i32
    %c0_i32_0 = arith.constant 0 : i32
    %c0_i32_1 = arith.constant 0 : i32
    return %arg0, %c0_i32, %c0_i32_0 : i32, i32, i32
  }
  func.func @transform_1(%arg0: i32) -> (i32, i32) {
    %c0_i32 = arith.constant 0 : i32
    %c0_i32_0 = arith.constant 0 : i32
    %c0_i32_1 = arith.constant 0 : i32
    return %c0_i32, %c0_i32_0 : i32, i32
  }
  func.func @transform_2(%arg0: i32) -> (i32, i32) {
    %c0_i32 = arith.constant 0 : i32
    %c0_i32_0 = arith.constant 0 : i32
    %c0_i32_1 = arith.constant 0 : i32
    return %c0_i32, %c0_i32_0 : i32, i32
  }
  func.func @transform_3(%arg0: i32) -> (i32, i32) {
    %c0_i32 = arith.constant 0 : i32
    %c0_i32_0 = arith.constant 0 : i32
    %c0_i32_1 = arith.constant 0 : i32
    return %c0_i32, %c0_i32_0 : i32, i32
  }
  func.func @transform_4(%arg0: i32) -> (i32, i32, i32) {
    %c0_i32 = arith.constant 0 : i32
    %c0_i32_0 = arith.constant 0 : i32
    %c0_i32_1 = arith.constant 0 : i32
    %c0_i32_2 = arith.constant 0 : i32
    return %c0_i32, %c0_i32_0, %c0_i32_1 : i32, i32, i32
  }
  func.func @transform_5(%arg0: i32) -> (i32, i32) {
    %c0_i32 = arith.constant 0 : i32
    %c0_i32_0 = arith.constant 0 : i32
    %c0_i32_1 = arith.constant 0 : i32
    return %c0_i32, %c0_i32_0 : i32, i32
  }
  func.func @transform_6(%arg0: i32) -> (i32, i32) {
    %c0_i32 = arith.constant 0 : i32
    %c0_i32_0 = arith.constant 0 : i32
    %c0_i32_1 = arith.constant 0 : i32
    return %c0_i32, %c0_i32_0 : i32, i32
  }
  func.func @transform_7(%arg0: i32) -> (i32, i32, i32) {
    %c0_i32 = arith.constant 0 : i32
    %c0_i32_0 = arith.constant 0 : i32
    %c0_i32_1 = arith.constant 0 : i32
    %c0_i32_2 = arith.constant 0 : i32
    return %c0_i32, %c0_i32_0, %c0_i32_1 : i32, i32, i32
  }
  func.func @transform_8(%arg0: i32) -> (i32, i32) {
    %c0_i32 = arith.constant 0 : i32
    %c0_i32_0 = arith.constant 0 : i32
    %c0_i32_1 = arith.constant 0 : i32
    return %c0_i32, %c0_i32_0 : i32, i32
  }
  func.func @transform_9(%arg0: i32) -> (i32, i32) {
    %c0_i32 = arith.constant 0 : i32
    %c0_i32_0 = arith.constant 0 : i32
    %c0_i32_1 = arith.constant 0 : i32
    return %c0_i32, %c0_i32_0 : i32, i32
  }
  func.func @transform_10(%arg0: i32) -> (i32, i32) {
    %c0_i32 = arith.constant 0 : i32
    %c0_i32_0 = arith.constant 0 : i32
    %c0_i32_1 = arith.constant 0 : i32
    return %c0_i32, %c0_i32_0 : i32, i32
  }
  func.func @transform_11(%arg0: i32) -> (i32, i32) {
    %c0_i32 = arith.constant 0 : i32
    %c0_i32_0 = arith.constant 0 : i32
    %c0_i32_1 = arith.constant 0 : i32
    return %c0_i32, %c0_i32_0 : i32, i32
  }
  func.func @transform_12(%arg0: i32) -> (i32, i32) {
    %c0_i32 = arith.constant 0 : i32
    %c0_i32_0 = arith.constant 0 : i32
    %c0_i32_1 = arith.constant 0 : i32
    return %c0_i32, %c0_i32_0 : i32, i32
  }
  func.func @transform_13(%arg0: i32) -> (i32, i32) {
    %c0_i32 = arith.constant 0 : i32
    %c0_i32_0 = arith.constant 0 : i32
    %c0_i32_1 = arith.constant 0 : i32
    return %c0_i32, %c0_i32_0 : i32, i32
  }
  func.func @transform_14(%arg0: i32) -> (i32, i32) {
    %c0_i32 = arith.constant 0 : i32
    %c0_i32_0 = arith.constant 0 : i32
    %c0_i32_1 = arith.constant 0 : i32
    return %c0_i32, %c0_i32_0 : i32, i32
  }
  func.func @transform_15(%arg0: i32) -> (i32, i32, i32) {
    %c0_i32 = arith.constant 0 : i32
    %c0_i32_0 = arith.constant 0 : i32
    %c0_i32_1 = arith.constant 0 : i32
    return %arg0, %c0_i32, %c0_i32_0 : i32, i32, i32
  }
}

</mosaic_0001>

<bundles_post_ra>
// kernel: poblock_forward.1
= control target key start
LH: loop header
LB: loop body
LE: loop exit
PB: predicated region body
PF: predicated region fallthrough
CT: control target
= control target key end

     0   :  { %s3617_s0 = inlined_call_operand.vmem [shape: f32[2,64,16], index: 0, kind: input, shape index: {}]   ;;  %s3618_s1 = inlined_call_operand.vmem [shape: f32[16,64], index: 1, kind: input, shape index: {}]   ;;  %s3619_s2 = inlined_call_operand.vmem [shape: f32[1,64], index: 2, kind: input, shape index: {}]   ;;  %s3620_s3 = inlined_call_operand.vmem [shape: f32[1,64], index: 3, kind: input, shape index: {}]   ;;  %s3621_s4 = inlined_call_operand.hbm [shape: f32[3,3,64], index: 4, kind: input, shape index: {}]   ;;  %s3622_s5 = inlined_call_operand.hbm [shape: f32[1,64], index: 5, kind: input, shape index: {}]   ;;  %s3623_s6 = inlined_call_operand.hbm [shape: f32[1,64], index: 6, kind: input, shape index: {}]   ;;  %s3624_s7 = inlined_call_operand.hbm [shape: f32[3,64,1], index: 7, kind: input, shape index: {}]   ;;  %s3625_s8 = inlined_call_operand.vmem [shape: f32[64,16], index: 8, kind: input, shape index: {}]   ;;  %s3626_s9 = inlined_call_operand.vmem [shape: f32[1,16], index: 9, kind: input, shape index: {}]   ;;  %s3627_s10 = inlined_call_operand.vmem [shape: f32[16,64], index: 10, kind: input, shape index: {}]   ;;  %s3628_s11 = inlined_call_operand.vmem [shape: f32[1,64], index: 11, kind: input, shape index: {}]   ;;  %s3629_s12 = inlined_call_operand.vmem [shape: f32[64,16], index: 12, kind: input, shape index: {}]   ;;  %s3630_s13 = inlined_call_operand.hbm [shape: f32[1,16], index: 13, kind: input, shape index: {}]   ;;  %s3631_s14 = inlined_call_operand.hbm [shape: f32[1,16], index: 14, kind: input, shape index: {}]   ;;  %s3632_s15 = inlined_call_operand.hbm [shape: f32[2,64,16], index: 15, kind: output, shape index: {}]  }
   0x1   :  { %3677 = sst [smem:[#allocation48_spill]] %s3622_s5 }
   0x2   :  { %3678 = sst [smem:[#allocation49_spill]] %s3632_s15 }
   0x3   :  { %20 = vsyncpa [#allocation4], 0 }
   0x4   :  { %21 = vsyncpa [#allocation7], 0 }
   0x5   :  { %22 = vsyncpa [#allocation10], 0 }
   0x6   :  { %23 = vsyncpa [#allocation13], 0 }
   0x7   :  { %24 = vsyncpa [#allocation5], 0 }
   0x8   :  { %26 = vsyncpa [#allocation5 + $0x1], 0  ;;  %s2682_s18 = smov 0   ;;  %s2684_s19 = smov 0  }
   0x9   :  { %s2686_s20 = smov 0   ;;  %s2688_s21 = smov 0  }
   0xa LB: > { %3679 = sst [smem:[#allocation20_spill]] %s2572_s18  ;;  %s2703_s22 = sadd.s32 4294967295, %s2584_s21   ;;  %s2584_s21 = sphi %s2688_s21, %s3761_s21   ;;  %s2580_s20 = sphi %s2686_s20, %s3763_s20   ;;  %s2576_s19 = sphi %s2684_s19, %s3765_s19   ;;  %s2572_s18 = sphi %s2682_s18, %s3764_s18  }
   0xb   : > { %3680 = sst [smem:[#allocation21_spill]] %s2580_s20  ;;  %s2070_s23 = sadd.s32 4294967294, %s2584_s21  }
   0xc   : > { %3681 = sst [smem:[#allocation22_spill]] %s2584_s21  ;;  %s2707_s24 = sadd.s32 1, %s2584_s21  }
   0xd   : > { %3682 = sst [smem:[#allocation23_spill]] %s2707_s24  ;;  %s359_s25 = sadd.s32 1, %s2580_s20 }
   0xe   : > { %s356_s26 = ssub.s32 %s2584_s21, %s2707_s24  ;;  %p369_p0 = scmp.ne.s32.totalorder %s2580_s20, %s2576_s19 }
   0xf   : > { %p357_p1 = scmp.eq.s32.totalorder %s356_s26, 0  ;;  %p370_p2 = scmp.eq.s32.totalorder %s2703_s22, 1 }
  0x10   : > { %p375_p3 = scmp.ne.s32.totalorder %s2576_s19, %s2572_s18  ;;  %p376_p4 = scmp.eq.s32.totalorder %s2070_s23, 1 }
  0x11   : > { %s2718_s27 = scalar_select %p357_p1, %s2580_s20, %s359_s25  }
  0x12   : > { %p2720_p5 = por %p370_p2, %p369_p0  ;;  %p2724_p6 = por %p376_p4, %p375_p3 }
  0x13   : > { %3683 = sst [smem:[#allocation24_spill]] %s2718_s27  ;;  %p2071_p7 = scmp.ge.s32.totalorder %s2584_s21, 1 }
  0x14   : > { %s3684_s28 = scalar_select %p2720_p5, 1, 0 }
  0x15   : > { %s3685_s29 = scalar_select %p2724_p6, 1, 0 }
  0x16   : > { %p383_p8 = scmp.lt.s32.totalorder %s2584_s21, 3  ;;  %p3638_p9 = scmp.eq.s32.totalorder %s2703_s22, 0 }
  0x17   : > { %3686 = sst [smem:[#allocation25_spill]] %s3685_s29  ;;  %s2586_s16 = smov [#allocation6]  }
  0x18   : > { %p2731_p10 = pnand %p2071_p7, %p383_p8  ;;  %s418_s17 = sshll.u32 %s2586_s16, 4  ;;  %s419_s17 = int_to_ptr.vmem [resolvable:$true] %s418_s17 }
  0x19   : > { %s2587_s23 = smov [#allocation9]   ;;  %s2588_s27 = smov [#allocation3]  }
  0x1a   : > { %p2255_p11 = pneg %p2731_p10  ;;  %s439_s25 = sshll.u32 %s2587_s23, 4  ;;  %s2743_s25 = int_to_ptr.vmem [resolvable:$true] %s439_s25 }
  0x1b   : > { %s404_s20 = sshll.u32 %s2588_s27, 4  ;;  %s2363_s16 = scalar_lea.vmem %s419_s17, 16  ;;  %s405_s20 = int_to_ptr.vmem [resolvable:$true] %s404_s20 }
  0x1c   : > { %p2739_p12 = pnand %p3638_p9, %p2255_p11  ;;  %p2364_p0 = scmp.ne.s32.totalorder %s419_s17, %s2363_s16 }
  0x1d   : > { %s2370_s23 = scalar_lea.vmem %s419_s17, 32  ;;  %p2371_p3 = scmp.lt.s32.totalorder %s419_s17, %s419_s17 }
  0x1e   : > { %p2747_p13 = pneg %p2739_p12  ;;  %p2372_p4 = scmp.lt.s32.totalorder %s2370_s23, %s2363_s16 }
  0x20   : > { %p2366_p1 = pnand %p2364_p0, %p2747_p13  ;;  %p2373_p7 = por %p2372_p4, %p2371_p3 }
  0x22   : > { %p2367_p2 = pneg %p2366_p1 }
  0x24   : > { %p2374_p8 = pnand %p2373_p7, %p2367_p2 }
  0x26   : > { %2377 = shalt.err (!%p2374_p8)
}
  0x27   : > { %s3690_s5 = sld [smem:[#allocation48_spill]]  ;;  %s2389_s18 = scalar_lea.vmem %s2743_s25, 3072 }
  0x28   : > { %p2390_p11 = scmp.ne.s32.totalorder %s2743_s25, %s2389_s18  ;;  %p2397_p9 = scmp.lt.s32.totalorder %s2743_s25, %s2743_s25 }
  0x29   : > { %p2398_p3 = scmp.lt.s32.totalorder %s2389_s18, %s2389_s18 }
  0x2a   : > { %p2392_p0 = pnand %p2390_p11, %p2747_p13 }
  0x2b   : > { %p2399_p2 = por %p2398_p3, %p2397_p9 }
  0x2c   : > { %p2393_p1 = pneg %p2392_p0 }
  0x2d   : > { %2261 = dma.hbm_to_vmem [thread:$0]  (!%p2739_p12), %s3690_s5, 16, %s419_s17, [#allocation7]  }
  0x2e   : > { %p2400_p4 = pnand %p2399_p2, %p2393_p1 }
  0x30   : > { %2403 = shalt.err (!%p2400_p4)
}
  0x31   : > { %s2589_s16 = smov 128   ;;  %s2590_s29 = smov 8  }
  0x32   : > { %2267 = dma.hbm_to_vmem [thread:$0]  (!%p2739_p12), %s3624_s7, 3072, %s2743_s25, [#allocation10], %s2589_s16, %s2589_s16, %s2590_s29  }
  0x33   : > { %s2415_s17 = scalar_lea.vmem %s405_s20, 192  ;;  %p2423_p0 = scmp.lt.s32.totalorder %s405_s20, %s405_s20 }
  0x34   : > { %p2416_p7 = scmp.ne.s32.totalorder %s405_s20, %s2415_s17  ;;  %p2424_p9 = scmp.lt.s32.totalorder %s2415_s17, %s2415_s17 }
  0x36   : > { %p2418_p8 = pnand %p2416_p7, %p2747_p13  ;;  %p2425_p1 = por %p2424_p9, %p2423_p0 }
  0x38   : > { %p2419_p11 = pneg %p2418_p8 }
  0x3a   : > { %p2426_p3 = pnand %p2425_p1, %p2419_p11 }
  0x3c   : > { %2429 = shalt.err (!%p2426_p3)
}
  0x3d   : > { %s2591_s18 = smov 64   ;;  %s2592_s5 = smov 4  }
  0x3e   : > { %2258 = dma.hbm_to_vmem [thread:$0]  (!%p2739_p12), %s3621_s4, 192, %s405_s20, [#allocation4], %s2591_s18, %s2591_s18, %s2592_s5  }
  0x3f   : > { %s2593_s25 = smov [#allocation8]   ;;  %s2594_s29 = smov [#allocation11]  }
  0x40   : > { %s429_s16 = sshll.u32 %s2593_s25, 4  ;;  %s468_s23 = sshll.u32 %s2594_s29, 4  ;;  %s430_s16 = int_to_ptr.vmem [resolvable:$true] %s429_s16  ;;  %s469_s23 = int_to_ptr.vmem [resolvable:$true] %s468_s23 }
  0x41   : > { %s2441_s27 = scalar_lea.vmem %s430_s16, 16  ;;  %s2448_s17 = scalar_lea.vmem %s430_s16, 32 }
  0x42   : > { %p2442_p2 = scmp.ne.s32.totalorder %s430_s16, %s2441_s27  ;;  %p2449_p8 = scmp.lt.s32.totalorder %s430_s16, %s430_s16 }
  0x43   : > { %p2450_p11 = scmp.lt.s32.totalorder %s2448_s17, %s2441_s27 }
  0x44   : > { %p2444_p4 = pnand %p2442_p2, %p2747_p13 }
  0x45   : > { %p2451_p0 = por %p2450_p11, %p2449_p8 }
  0x46   : > { %p2445_p7 = pneg %p2444_p4 }
  0x48   : > { %p2452_p9 = pnand %p2451_p0, %p2445_p7 }
  0x4a   : > { %2455 = shalt.err (!%p2452_p9)
}
  0x4b   : > { %2264 = dma.hbm_to_vmem [thread:$0]  (!%p2739_p12), %s3623_s6, 16, %s430_s16, [#allocation7]  }
  0x4c   : > { %s2467_s20 = scalar_lea.vmem %s469_s23, 16  ;;  %s2474_s21 = scalar_lea.vmem %s469_s23, 32 }
  0x4d   : > { %p2468_p1 = scmp.ne.s32.totalorder %s469_s23, %s2467_s20  ;;  %p2475_p4 = scmp.lt.s32.totalorder %s469_s23, %s469_s23 }
  0x4e   : > { %p2476_p6 = scmp.lt.s32.totalorder %s2474_s21, %s2467_s20 }
  0x4f   : > { %p2470_p3 = pnand %p2468_p1, %p2747_p13 }
  0x50   : > { %p2477_p5 = por %p2476_p6, %p2475_p4 }
  0x51   : > { %p2471_p2 = pneg %p2470_p3 }
  0x53   : > { %p2478_p8 = pnand %p2477_p5, %p2471_p2 }
  0x55   : > { %2481 = shalt.err (!%p2478_p8)
}
  0x56   : > { %2270 = dma.hbm_to_vmem [thread:$0]  (!%p2739_p12), %s3630_s13, 16, %s469_s23, [#allocation10]  }
  0x57   : > { %s2595_s16 = smov [#allocation12]  }
  0x58   : > { %s479_s29 = sshll.u32 %s2595_s16, 4  ;;  %s480_s29 = int_to_ptr.vmem [resolvable:$true] %s479_s29 }
  0x59   : > { %s2493_s27 = scalar_lea.vmem %s480_s29, 16  ;;  %s2500_s17 = scalar_lea.vmem %s480_s29, 32 }
  0x5a   : > { %p2494_p7 = scmp.ne.s32.totalorder %s480_s29, %s2493_s27  ;;  %p2501_p9 = scmp.lt.s32.totalorder %s480_s29, %s480_s29 }
  0x5b   : > { %p2502_p6 = scmp.lt.s32.totalorder %s2500_s17, %s2493_s27 }
  0x5c   : > { %p2496_p11 = pnand %p2494_p7, %p2747_p13 }
  0x5d   : > { %p2503_p5 = por %p2502_p6, %p2501_p9 }
  0x5e   : > { %p2497_p0 = pneg %p2496_p11 }
  0x60   : > { %p2504_p1 = pnand %p2503_p5, %p2497_p0 }
  0x62   : > { %2507 = shalt.err (!%p2504_p1)
}
  0x63   : > { %2273 = dma.hbm_to_vmem [thread:$0]  (!%p2739_p12), %s3631_s14, 16, %s480_s29, [#allocation13]  }
  0x64   : > { %500 = sbr.rel (%p2731_p10) target bundleno = 1111 (0x457), region = 80 }
  0x69   : > { %p3691_p3 = scmp.eq.s32.totalorder %s2703_s22, 0 }
  0x6b   : > { %2551 = dma.done.wait (%p3691_p3), [#allocation4], 192   ;;  %p3692_p13 = pmov %p3691_p3 }
  0x6c   : > { %p3693_p2 = pmov %p3691_p3 }
  0x6d   : > { %2553 = vsyncadd (%p3692_p13), [#allocation4], 4294967104 }
  0x6e   : > { %2555 = dma.done.wait (%p3693_p2), [#allocation7], 32   ;;  %p3694_p4 = pmov %p3693_p2 }
  0x6f   : > { %p3695_p8 = pmov %p3693_p2 }
  0x70   : > { %2557 = vsyncadd (%p3694_p4), [#allocation7], 4294967264 }
  0x71   : > { %2559 = dma.done.wait (%p3695_p8), [#allocation10], 3088   ;;  %p3696_p12 = pmov %p3693_p2 }
  0x72   : > { %p3697_p10 = pmov %p3693_p2 }
  0x73   : > { %2561 = vsyncadd (%p3696_p12), [#allocation10], 4294964208 }
  0x74   : > { %2563 = dma.done.wait (%p3697_p10), [#allocation13], 16   ;;  %p3698_p7 = pmov %p3693_p2 }
  0x75   : > { %p568_p11 = scmp.lt.s32.totalorder %s2703_s22, 1  ;;  %v2596_v0 = vmov 0   ;;  %vm583_vm0 = vcmask 130048   ;;  %v582_v1 = vld [vmem:[%s3618_s1 + $0x8] sm:$0xff]  ;;  %v581_v2 = vld [vmem:[%s3618_s1] sm:$0xff]  ;;  %vm759_vm1 = vcmask 523264   ;;  %v819_v54 = vlaneseq }
  0x76   : > { %2565 = vsyncadd (%p3698_p7), [#allocation13], 4294967280  ;;  %2339 = vset.pattern.permute.xlu1 %v2596_v0  ;;  %2338 = vset.pattern.permute.xlu0 %v2596_v0  ;;  %v3642_v4 = vmov 0.0   ;;  %v813_v7 = vld [vmem:[#allocation9 + $0x90] sm:$0xff]  ;;  %v811_v8 = vld [vmem:[#allocation9 + $0x80] sm:$0xff]  ;;  %vm2598_vm2 = vmmov 0  }
  0x77   : > { %s569_s24 = scalar_select %p568_p11, %s2703_s22, 1  ;;  %2159 = vmatprep.subr.mxu0 %v582_v1  ;;  %761 = vst.msk [vmem:[#allocation2 + $0x8] sm:$0xff] %vm759_vm1, %v3642_v4  ;;  %760 = vst.msk [vmem:[#allocation2] sm:$0xff] %vm759_vm1, %v3642_v4  ;;  %1031 = vperm.xlu1 %2339, %v813_v7   ;;  %v795_v9 = vld [vmem:[#allocation9] sm:$0xff]  ;;  %v812_v11 = vld [vmem:[#allocation9 + $0x88] sm:$0xff]  ;;  %v820_v57 = vshrl.u32 %v819_v54, 7 }
  0x78   : > { %762 = vst.msk [vmem:[#allocation2 + $0x10] sm:$0xff] %vm759_vm1, %v3642_v4  ;;  %763 = vst.msk [vmem:[#allocation2 + $0x18] sm:$0xff] %vm759_vm1, %v3642_v4  ;;  %2160 = vmatpush3.msra.mxu0 %v582_v1  ;;  %1023 = vperm.xlu0 %2338, %v811_v8   ;;  %v797_v13 = vld [vmem:[#allocation9 + $0x10] sm:$0xff]  ;;  %v796_v15 = vld [vmem:[#allocation9 + $0x8] sm:$0xff]  ;;  %vm1053_vm3 = vcmask 1040384   ;;  %vm864_vm4 = vcmask 1046528  }
  0x79   : > { %s2119_s30 = sshll.u32 %s569_s24, 6  ;;  %764 = vst.msk [vmem:[#allocation2 + $0x20] sm:$0xff] %vm759_vm1, %v3642_v4  ;;  %765 = vst.msk [vmem:[#allocation2 + $0x28] sm:$0xff] %vm759_vm1, %v3642_v4  ;;  %2161 = vmatprep.subr.mxu0 %v581_v2  ;;  %v804_v17 = vld [vmem:[#allocation9 + $0x48] sm:$0xff]  ;;  %v803_v19 = vld [vmem:[#allocation9 + $0x40] sm:$0xff]  ;;  %v909_v59 = vsub.s32 1, %v820_v57 }
  0x7a   : > { %s2821_s20 = scalar_lea.vmem %s3617_s0, %s2119_s30  ;;  %766 = vst.msk [vmem:[#allocation2 + $0x30] sm:$0xff] %vm759_vm1, %v3642_v4  ;;  %767 = vst.msk [vmem:[#allocation2 + $0x38] sm:$0xff] %vm759_vm1, %v3642_v4  ;;  %2162 = vmatpush3.msra.mxu0 %v581_v2  ;;  %v814_v20 = vld [vmem:[#allocation9 + $0x98] sm:$0xff]  ;;  %v805_v21 = vld [vmem:[#allocation9 + $0x50] sm:$0xff]  ;;  %v1010_v62 = vsub.s32 2, %v820_v57  ;;  %v2928_v63 = vsub.s32 0, %v820_v57 }
  0x7b   : > { %v573_v3 = vld [vmem:[%s2821_s20] sm:$0xff]  ;;  %768 = vst.msk [vmem:[#allocation2 + $0x40] sm:$0xff] %vm759_vm1, %v3642_v4  ;;  %769 = vst.msk [vmem:[#allocation2 + $0x48] sm:$0xff] %vm759_vm1, %v3642_v4  ;;  %v574_v5 = vld [vmem:[%s2821_s20 + $0x8] sm:$0xff]  ;;  %2175 = vmatprep.subr.mxu0 %v3642_v4  ;;  %834 = vperm.xlu1 %2339, %v795_v9   ;;  %vm1096_vm5 = vcmask 1045504   ;;  %s565_s24 = sand.u32 1, %s2576_s19  }
  0x7c   : > { %2163 = vmatprep.mubr.msk.f32.mxu0 %vm583_vm0, %v573_v3  ;;  %770 = vst.msk [vmem:[#allocation2 + $0x50] sm:$0xff] %vm759_vm1, %v3642_v4  ;;  %771 = vst.msk [vmem:[#allocation2 + $0x58] sm:$0xff] %vm759_vm1, %v3642_v4  ;;  %v575_v6 = vld [vmem:[%s2821_s20 + $0x10] sm:$0xff]  ;;  %v576_v10 = vld [vmem:[%s2821_s20 + $0x18] sm:$0xff]  ;;  %1027 = vperm.xlu0 %2338, %v812_v11   ;;  %s2086_s30 = sshll.u32 %s565_s24, 6  ;;  %s2120_s23 = sshll.u32 %s2703_s22, 10 }
  0x7d   : > { %2164 = vmatmul.mubr.msk.f32.vlgmr.msra.gmra.mxu0 %vm583_vm0, %v574_v5  ;;  %v577_v12 = vld [vmem:[%s2821_s20 + $0x20] sm:$0xff]  ;;  %v578_v14 = vld [vmem:[%s2821_s20 + $0x28] sm:$0xff]  ;;  %v579_v16 = vld [vmem:[%s2821_s20 + $0x30] sm:$0xff]  ;;  %3700 = vst [vmem:[#allocation27_spill] sm:$0xff] %v2928_v63  ;;  %s3541_s26 = scalar_lea.vmem [#allocation14], %s2086_s30  ;;  %s3755_s16 = sld [smem:[#allocation49_spill]] }
  0x7e   : > { %2166 = vmatprep.mubr.msk.f32.mxu0 %vm583_vm0, %v575_v6  ;;  %v580_v18 = vld [vmem:[%s2821_s20 + $0x38] sm:$0xff]  ;;  %v806_v22 = vld [vmem:[#allocation9 + $0x58] sm:$0xff]  ;;  %v799_v24 = vld [vmem:[#allocation9 + $0x20] sm:$0xff]  ;;  %s1948_s21 = sshll.u32 %s3541_s26, 4  ;;  %s3577_s22 = scalar_lea.sflag [#allocation5], %s565_s24  ;;  %s3568_s21 = int_to_ptr.vmem [resolvable:$true] %s1948_s21 }
  0x7f   : > { %842 = vperm.xlu1 %2339, %v797_v13   ;;  %v798_v23 = vld [vmem:[#allocation9 + $0x18] sm:$0xff]  ;;  %v815_v25 = vld [vmem:[#allocation9 + $0xa0] sm:$0xff]  ;;  %v816_v26 = vld [vmem:[#allocation9 + $0xa8] sm:$0xff]  ;;  %s2508_s27 = scalar_lea.vmem %s3568_s21, 1024  ;;  %p3756_p9 = scmp.ne.s32.totalorder %s3684_s28, 0 }
  0x80   : > { %838 = vperm.xlu0 %2338, %v796_v15   ;;  %v807_v27 = vld [vmem:[#allocation9 + $0x60] sm:$0xff]  ;;  %v808_v28 = vld [vmem:[#allocation9 + $0x68] sm:$0xff]  ;;  %v801_v30 = vld [vmem:[#allocation9 + $0x30] sm:$0xff]  ;;  %p2509_p0 = scmp.ne.s32.totalorder %s3568_s21, %s2508_s27  ;;  %s2599_s17 = smov [#allocation14]  }
  0x81   : > { %2167 = vmatmul.mubr.msk.f32.gmra.mxu0 %vm583_vm0, %v576_v10  ;;  %v800_v29 = vld [vmem:[#allocation9 + $0x28] sm:$0xff]  ;;  %v817_v31 = vld [vmem:[#allocation9 + $0xb0] sm:$0xff]  ;;  %v818_v32 = vld [vmem:[#allocation9 + $0xb8] sm:$0xff]  ;;  %s2512_s15 = sshll.u32 %s2599_s17, 4  ;;  %s2513_s15 = int_to_ptr.vmem [resolvable:$false] %s2512_s15 }
  0x82   : > { %2169 = vmatprep.mubr.msk.f32.mxu0 %vm583_vm0, %v577_v12  ;;  %v809_v33 = vld [vmem:[#allocation9 + $0x70] sm:$0xff]  ;;  %v810_v34 = vld [vmem:[#allocation9 + $0x78] sm:$0xff]  ;;  %v1562_v36 = vld [vmem:[%s3625_s8 + $0x38] sm:$0xff]  ;;  %p2510_p6 = pnand %p2509_p0, %p3756_p9  ;;  %s2514_s5 = scalar_lea.vmem %s2513_s15, 2048 }
  0x83   : > { %926 = vperm.xlu1 %2339, %v804_v17   ;;  %v802_v35 = vld [vmem:[#allocation9 + $0x38] sm:$0xff]  ;;  %v1561_v37 = vld [vmem:[%s3625_s8 + $0x30] sm:$0xff]  ;;  %2176 = vmatpush3.msra.mxu0 %v1562_v36  ;;  %v1559_v39 = vld [vmem:[%s3625_s8 + $0x20] sm:$0xff]  ;;  %s3566_s29 = scalar_lea.hbm %s3755_s16, %s2120_s23  ;;  %p2515_p1 = scmp.lt.s32.totalorder %s3568_s21, %s2513_s15 }
  0x84   : > { %921 = vperm.xlu0 %2338, %v803_v19   ;;  %2177 = vmatprep.subr.mxu0 %v3642_v4  ;;  %v1560_v38 = vld [vmem:[%s3625_s8 + $0x28] sm:$0xff]  ;;  %v1558_v40 = vld [vmem:[%s3625_s8 + $0x18] sm:$0xff]  ;;  %v1557_v41 = vld [vmem:[%s3625_s8 + $0x10] sm:$0xff]  ;;  %p2511_p5 = pneg %p2510_p6  ;;  %p2516_p3 = scmp.lt.s32.totalorder %s2514_s5, %s2508_s27 }
  0x85   : > { %2170 = vmatmul.mubr.msk.f32.gmra.mxu0 %vm583_vm0, %v578_v14  ;;  %v1556_v42 = vld [vmem:[%s3625_s8 + $0x8] sm:$0xff]  ;;  %v1555_v43 = vld [vmem:[%s3625_s8] sm:$0xff] }
  0x86   : > { %2172 = vmatprep.mubr.msk.f32.mxu0 %vm583_vm0, %v579_v16  ;;  %2178 = vmatpush3.msra.mxu0 %v1561_v37  ;;  %v792_v60 = vld [vmem:[#allocation3] sm:$0x7]  ;;  %v781_v2 = vld [vmem:[#allocation2 + $0x8] sm:$0xff]  ;;  %v793_v15 = vld [vmem:[#allocation3 + $0x4] sm:$0x7]  ;;  %p2517_p13 = por %p2516_p3, %p2515_p1 }
  0x87   : > { %1035 = vperm.xlu1 %2339, %v814_v20   ;;  %2179 = vmatprep.subr.mxu0 %v3642_v4  ;;  %v2930_v0 = vrot.slane %v792_v60, %v909_v59  ;;  %v2934_v3 = vrot.slane %v792_v60, %v1010_v62  ;;  %v2939_v6 = vrot.slane %v792_v60, %v2928_v63  ;;  %v780_v8 = vld [vmem:[#allocation2] sm:$0xff]  ;;  %v794_v17 = vld [vmem:[#allocation3 + $0x8] sm:$0x7] }
  0x88   : > { %931 = vperm.xlu0 %2338, %v805_v21   ;;  %2180 = vmatpush3.msra.mxu0 %v1560_v38  ;;  %v2959_v19 = vrot.slane %v793_v15, %v2928_v63  ;;  %v2987_v36 = vld [vmem:[%s3619_s2] ss:$0 sm:$0xff]  ;;  %p2518_p2 = pnand %p2517_p13, %p2511_p5 }
  0x89   : > { %2173 = vmatmul.mubr.msk.f32.gmra.mxu0 %vm583_vm0, %v580_v18  ;;  %2181 = vmatprep.subr.mxu0 %v3642_v4  ;;  %v911_v7 = vmul.f32 %v2930_v0, %v781_v2  ;;  %v1012_v10 = vmul.f32 %v2934_v3, %v781_v2  ;;  %v823_v13 = vmul.f32 %v2939_v6, %v780_v8 }
  0x8a   : > { %2191 = vmatprep.mubr.msk.f32.mxu0 %vm2598_vm2, %v3642_v4  ;;  %2182 = vmatpush3.msra.mxu0 %v1559_v39 }
  0x8b   : > { %936 = vperm.xlu1 %2339, %v806_v22   ;;  %2183 = vmatprep.subr.mxu0 %v3642_v4 }
  0x8c   : > { %846 = vperm.xlu0 %2338, %v798_v23   ;;  %2184 = vmatpush3.msra.mxu0 %v1558_v40  ;;  %v2965_v23 = vrot.slane %v793_v15, %v1010_v62 }
  0x8d   : > { %2185 = vmatprep.subr.mxu0 %v3642_v4 }
  0x8e   : > { %2186 = vmatpush3.msra.mxu0 %v1557_v41  ;;  %3704 = vst [vmem:[#allocation31_spill] sm:$0xff] %v2965_v23 }
  0x8f   : > { %850 = vperm.xlu1 %2339, %v799_v24   ;;  %2187 = vmatprep.subr.mxu0 %v3642_v4  ;;  %v2967_v24 = vrot.slane %v794_v17, %v1010_v62 }
  0x90   : > { %1039 = vperm.xlu0 %2338, %v815_v25   ;;  %2188 = vmatpush3.msra.mxu0 %v1556_v42  ;;  %v791_v25 = vld [vmem:[#allocation2 + $0x58] sm:$0xff] }
  0x91   : > { %2189 = vmatprep.subr.mxu0 %v3642_v4  ;;  %3705 = vst [vmem:[#allocation32_spill] sm:$0xff] %v2967_v24  ;;  %v1394_v39 = vmul.f32 %v2967_v24, %v791_v25 }
  0x92   : > { %2190 = vmatpush3.msra.mxu0 %v1555_v43 }
  0x93   : > { %1043 = vperm.xlu1 %2339, %v816_v26   ;;  %2194 = vmatprep.subr.mxu0 %v3642_v4  ;;  %v2970_v26 = vrot.slane %v794_v17, %v2928_v63 }
  0x94   : > { %941 = vperm.xlu0 %2338, %v807_v27   ;;  %v2972_v27 = vrot.slane %v794_v17, %v909_v59 }
  0x95   : > { %3706 = vst [vmem:[#allocation33_spill] sm:$0xff] %v2970_v26 }
  0x96   : > { %3707 = vst [vmem:[#allocation34_spill] sm:$0xff] %v2972_v27 }
  0x97   : > { %946 = vperm.xlu1 %2339, %v808_v28   ;;  %v824_v28 = vmul.f32 %v2939_v6, %v781_v2 }
  0x98   : > { %854 = vperm.xlu0 %2338, %v800_v29  }
  0x9b   : > { %858 = vperm.xlu1 %2339, %v801_v30  }
  0x9c   : > { %1047 = vperm.xlu0 %2338, %v817_v31   ;;  %v790_v31 = vld [vmem:[#allocation2 + $0x50] sm:$0xff] }
  0x9d   : > { %v1236_v40 = vmul.f32 %v2965_v23, %v790_v31  ;;  %v2995_v43 = vmul.f32 %v2970_v26, %v790_v31 }
  0x9f   : > { %1051 = vperm.xlu1 %2339, %v818_v32  }
  0xa0   : > { %951 = vperm.xlu0 %2338, %v809_v33   ;;  %v1136_v33 = vmul.f32 %v2959_v19, %v781_v2 }
  0xa3   : > { %956 = vperm.xlu1 %2339, %v810_v34  }
  0xa4   : > { %862 = vperm.xlu0 %2338, %v802_v35   ;;  %v2982_v35 = vrot.slane %v793_v15, %v909_v59 }
  0xf2   : > { %v2904_v44 = vpop.permute.xlu1 %1031 }
  0xf3   : > { %v1024_v45 = vpop.permute.xlu0 %1023  ;;  %v1057_v37 = vrot.slane %v2904_v44, 7  ;;  %v3002_v44 = vld [vmem:[%s3620_s3] ss:$0 sm:$0xff] }
  0xf4   : > { %v2945_v11 = vrot.slane %v1024_v45, 7  ;;  %v1393_v45 = vmul.f32 %v2967_v24, %v790_v31 }
  0xf6   : > { %v835_v46 = vpop.permute.xlu1 %834  ;;  %3702 = vst [vmem:[#allocation29_spill] sm:$0xff] %v2945_v11  ;;  %v2956_v18 = vmul.f32 %v2945_v11, %v1012_v10 }
  0xf7   : > { %v2906_v47 = vpop.permute.xlu0 %1027  ;;  %v2947_v12 = vrot.slane %v835_v46, 1  ;;  %v1332_v46 = vmul.f32 %v2972_v27, %v790_v31 }
  0xf8   : > { %v3644_v32 = vrot.slane %v2956_v18, 2  ;;  %v1055_v38 = vrot.slane %v2906_v47, 7 }
  0xf9   : > { %3703 = vst [vmem:[#allocation30_spill] sm:$0xff] %v2947_v12  ;;  %v889_v20 = vmul.f32 %v2947_v12, %v823_v13  ;;  %v1145_v59 = vmul.f32 %v1136_v33, %v2947_v12 }
  0xfa   : > { %v2908_v48 = vpop.permute.xlu1 %842  ;;  %v3019_v8 = vsel %vm1053_vm3, %v2945_v11, %v1055_v38  ;;  %v3022_v10 = vsel %vm1053_vm3, %v1055_v38, %v1057_v37 }
  0xfb   : > { %v2910_v49 = vpop.permute.xlu0 %838  ;;  %v868_v41 = vrot.slane %v2908_v48, 1  ;;  %3709 = vst [vmem:[#allocation36_spill] sm:$0xff] %v3019_v8  ;;  %3710 = vst [vmem:[#allocation37_spill] sm:$0xff] %v3022_v10 }
  0xfc   : > { %v866_v29 = vrot.slane %v2910_v49, 1 }
  0xfe   : > { %v2912_v50 = vpop.permute.xlu1 %926  ;;  %v3006_v47 = vsel %vm864_vm4, %v2947_v12, %v866_v29 }
  0xff   : > { %v2914_v51 = vpop.permute.xlu0 %921  ;;  %3708 = vst [vmem:[#allocation35_spill] sm:$0xff] %v3006_v47 }
 0x100   : > { %3699 = vst [vmem:[#allocation26_spill] sm:$0xff] %v2914_v51  ;;  %v2951_v14 = vmul.f32 %v2914_v51, %v911_v7 }
 0x102   : > { %v2916_v52 = vpop.permute.xlu1 %1035  ;;  %v3645_v21 = vrot.slane %v2951_v14, 1 }
 0x103   : > { %v2918_v53 = vpop.permute.xlu0 %931  ;;  %v1059_v62 = vrot.slane %v2916_v52, 7  ;;  %v3032_v52 = vsel %vm864_vm4, %v866_v29, %v868_v41 }
 0x104   : > { %v999_v34 = vadd.f32 %v3645_v21, %v889_v20  ;;  %v3029_v20 = vmul.f32 %v3006_v47, %v824_v28 }
 0x105   : > { %v3047_v29 = vsel %vm1053_vm3, %v1057_v37, %v1059_v62 }
 0x106   : > { %v2920_v55 = vpop.permute.xlu1 %936  ;;  %v1123_v60 = vadd.f32 %v3644_v32, %v999_v34  ;;  %3712 = vst [vmem:[#allocation39_spill] sm:$0xff] %v3047_v29 }
 0x107   : > { %v2922_v56 = vpop.permute.xlu0 %846 }
 0x108   : > { %v870_v2 = vrot.slane %v2922_v56, 1 }
 0x10a   : > { %v2924_v58 = vpop.permute.xlu1 %850 }
 0x10b   : > { %v2926_v61 = vpop.permute.xlu0 %1039  ;;  %v872_v25 = vrot.slane %v2924_v58, 1  ;;  %v3050_v58 = vsel %vm864_vm4, %v868_v41, %v870_v2 }
 0x10c   : > { %v1061_v56 = vrot.slane %v2926_v61, 7 }
 0x10e   : > { %v2932_v1 = vpop.permute.xlu1 %1043 }
 0x10f   : > { %v2936_v5 = vpop.permute.xlu0 %941  ;;  %v1063_v61 = vrot.slane %v2932_v1, 7 }
 0x112   : > { %v2942_v9 = vpop.permute.xlu1 %946 }
 0x113   : > { %3701 = vst [vmem:[#allocation28_spill] sm:$0xff] %v2942_v9  ;;  %v2953_v16 = vpop.permute.xlu0 %854 }
 0x116   : > { %v2963_v22 = vpop.permute.xlu1 %858 }
 0x117   : > { %v2976_v30 = vpop.permute.xlu0 %1047 }
 0x118   : > { %v3646_v48 = vrot.slane %v2976_v30, 7 }
 0x11a   : > { %v1052_v42 = vpop.permute.xlu1 %1051 }
 0x11b   : > { %v3009_v54 = vrot.slane %v1052_v42, 7  ;;  %v3024_v13 = vpop.permute.xlu0 %951  ;;  %v3044_v42 = vadd.f32 %v1145_v59, %v1123_v60  ;;  %v3059_v59 = vsel %vm864_vm4, %v870_v2, %v872_v25  ;;  %v3071_v2 = vsel %vm1053_vm3, %v1061_v56, %v1063_v61 }
 0x11c   : > { %3711 = vst [vmem:[#allocation38_spill] sm:$0xff] %v3024_v13 }
 0x11d   : > { %v3040_v33 = vsel %vm1053_vm3, %v3646_v48, %v3009_v54  ;;  %v1403_v37 = vmul.f32 %v1394_v39, %v3009_v54  ;;  %v874_v39 = vrot.slane %v2953_v16, 1 }
 0x11e   : > { %v3063_v41 = vmul.f32 %v1393_v45, %v3040_v33  ;;  %v876_v45 = vrot.slane %v2963_v22, 1 }
 0x11f   : > { %v863_v1 = vpop.permute.xlu0 %862 }
 0x120   : > { %3713 = vst [vmem:[#allocation40_spill] sm:$0xff] %v3063_v41  ;;  %v3081_v21 = vrot.slane %v863_v1, 1 }
 0x13d   : > { %v2165_v49 = vpop.f32.mrf.mxu0 }
 0x13e   : > { %v721_v57 = vmul.f32 %v2165_v49, %v2987_v36 }
 0x13f   : > { %v674_v7 = vpop.f32.mrf.mxu0 }
 0x140   : > { %v736_v15 = vadd.f32 %v3002_v44, %v721_v57  ;;  %v720_v17 = vmul.f32 %v2987_v36, %v674_v7 }
 0x141   : > { %v2168_v31 = vpop.f32.mrf.mxu0 }
 0x142   : > { %v744_v34 = vmax.f32 %v736_v15, 0.0  ;;  %v735_v38 = vadd.f32 %v3002_v44, %v720_v17  ;;  %v723_v28 = vmul.f32 %v2168_v31, %v2987_v36  ;;  %v3056_v17 = vsel %vm1053_vm3, %v1059_v62, %v1061_v56  ;;  %v3065_v31 = vpop.permute.xlu1 %956 }
 0x143   : > { %v684_v49 = vpop.f32.mrf.mxu0  ;;  %v3647_v56 = vrot.slane %v3063_v41, 2  ;;  %v3085_v16 = vmul.f32 %v1332_v46, %v3065_v31  ;;  %v3099_v46 = vsel %vm864_vm4, %v874_v39, %v876_v45 }
 0x144   : > { %v752_v57 = vmin.f32 %v744_v34, 6.0  ;;  %v743_v7 = vmax.f32 %v735_v38, 0.0  ;;  %v738_v4 = vadd.f32 %v3002_v44, %v723_v28  ;;  %v722_v15 = vmul.f32 %v2987_v36, %v684_v49 }
 0x145   : > { %v2171_v60 = vpop.f32.mrf.mxu0  ;;  %v3076_v49 = vmul.f32 %v1236_v40, %v3009_v54  ;;  %3715 = vst [vmem:[#allocation42_spill] sm:$0xff] %v3085_v16 }
 0x146   : > { %773 = vst.msk [vmem:[#allocation2 + $0x18] sm:$0xff] %vm759_vm1, %v752_v57  ;;  %v751_v34 = vmin.f32 %v743_v7, 6.0  ;;  %v746_v38 = vmax.f32 %v738_v4, 0.0  ;;  %v737_v28 = vadd.f32 %v3002_v44, %v722_v15  ;;  %v725_v62 = vmul.f32 %v2171_v60, %v2987_v36 }
 0x147   : > { %3714 = vst [vmem:[#allocation41_spill] sm:$0xff] %v3076_v49  ;;  %v694_v32 = vpop.f32.mrf.mxu0  ;;  %v1428_v60 = vrot.slane %v1403_v37, 2 }
 0x148   : > { %772 = vst.msk [vmem:[#allocation2 + $0x10] sm:$0xff] %vm759_vm1, %v751_v34  ;;  %v754_v57 = vmin.f32 %v746_v38, 6.0  ;;  %v745_v7 = vmax.f32 %v737_v28, 0.0  ;;  %v740_v4 = vadd.f32 %v3002_v44, %v725_v62  ;;  %v724_v15 = vmul.f32 %v2987_v36, %v694_v32 }
 0x149   : > { %v2174_v22 = vpop.f32.mrf.mxu0  ;;  %v3091_v28 = vsel %vm864_vm4, %v872_v25, %v874_v39  ;;  %v3716_v32 = vrot.slane %v2976_v30, 7  ;;  %v3107_v30 = vsel %vm864_vm4, %v876_v45, %v3081_v21  ;;  %v3116_v39 = vsel %vm1096_vm5, %v3647_v56, %v1428_v60 }
 0x14a   : > { %775 = vst.msk [vmem:[#allocation2 + $0x28] sm:$0xff] %vm759_vm1, %v754_v57  ;;  %v753_v40 = vmin.f32 %v745_v7, 6.0  ;;  %v748_v48 = vmax.f32 %v740_v4, 0.0  ;;  %v739_v34 = vadd.f32 %v3002_v44, %v724_v15  ;;  %v727_v38 = vmul.f32 %v2174_v22, %v2987_v36  ;;  %3718 = vst [vmem:[#allocation44_spill] sm:$0xff] %v3116_v39 }
 0x14b   : > { %v3096_v37 = vsel %vm1053_vm3, %v1063_v61, %v3716_v32  ;;  %v704_v62 = vpop.f32.mrf.mxu0  ;;  %v3111_v61 = vmul.f32 %v2995_v43, %v3081_v21 }
 0x14c   : > { %774 = vst.msk [vmem:[#allocation2 + $0x20] sm:$0xff] %vm759_vm1, %v753_v40  ;;  %v756_v57 = vmin.f32 %v748_v48, 6.0  ;;  %v747_v7 = vmax.f32 %v739_v34, 0.0  ;;  %v742_v4 = vadd.f32 %v3002_v44, %v727_v38  ;;  %v726_v25 = vmul.f32 %v2987_v36, %v704_v62 }
 0x14d   : > { %3717 = vst [vmem:[#allocation43_spill] sm:$0xff] %v3111_v61  ;;  %v3119_v15 = vld [vmem:[#allocation2 + $0x18] sm:$0xff] }
 0x14e   : > { %3719 = vst [vmem:[#allocation45_spill] sm:$0xff] %v3119_v15  ;;  %v913_v36 = vmul.f32 %v2930_v0, %v3119_v15  ;;  %v3125_v45 = vmul.f32 %v2934_v3, %v3119_v15  ;;  %777 = vst.msk [vmem:[#allocation2 + $0x38] sm:$0xff] %vm759_vm1, %v756_v57  ;;  %v755_v43 = vmin.f32 %v747_v7, 6.0  ;;  %v750_v22 = vmax.f32 %v742_v4, 0.0 }
 0x14f   : > { %v782_v40 = vld [vmem:[#allocation2 + $0x10] sm:$0xff]  ;;  %v741_v34 = vadd.f32 %v3002_v44, %v726_v25  ;;  %v826_v60 = vmul.f32 %v2939_v6, %v3119_v15  ;;  %v3133_v38 = vmul.f32 %v2959_v19, %v3119_v15  ;;  %v3137_v32 = vmul.f32 %v2982_v35, %v3119_v15 }
 0x150   : > { %v825_v62 = vmul.f32 %v2939_v6, %v782_v40  ;;  %v912_v57 = vmul.f32 %v2930_v0, %v782_v40  ;;  %v961_v7 = vmul.f32 %v2918_v53, %v913_v36  ;;  %v1013_v4 = vmul.f32 %v2934_v3, %v782_v40  ;;  %776 = vst.msk [vmem:[#allocation2 + $0x30] sm:$0xff] %vm759_vm1, %v755_v43 }
 0x151   : > { %v1137_v44 = vmul.f32 %v2959_v19, %v782_v40  ;;  %v1167_v25 = vmul.f32 %v2982_v35, %v782_v40  ;;  %v1228_v56 = vmul.f32 %v2965_v23, %v782_v40  ;;  %v3148_v48 = vmul.f32 %v2970_v26, %v782_v40  ;;  %v3155_v39 = vld [vmem:[#allocation2 + $0x28] sm:$0xff] }
 0x152   : > { %v891_v1 = vmul.f32 %v3032_v52, %v825_v62  ;;  %v960_v63 = vmul.f32 %v2912_v50, %v912_v57  ;;  %v978_v41 = vrot.slane %v961_v7, 1  ;;  %v3153_v36 = vmul.f32 %v3019_v8, %v1013_v4 }
 0x153   : > { %3720 = vst [vmem:[#allocation46_spill] sm:$0xff] %v3148_v48  ;;  %v3158_v43 = vmul.f32 %v1137_v44, %v3006_v47  ;;  %v3161_v24 = vmul.f32 %v1167_v25, %v2914_v51  ;;  %v3164_v16 = vmul.f32 %v1228_v56, %v2945_v11  ;;  %v3166_v40 = vld [vmem:[#allocation2 + $0x20] sm:$0xff]  ;;  %v758_v62 = vmin.f32 %v750_v22, 6.0 }
 0x154   : > { %v976_v27 = vrot.slane %v960_v63, 1  ;;  %v914_v7 = vmul.f32 %v2930_v0, %v3166_v40  ;;  %v749_v4 = vmax.f32 %v741_v34, 0.0  ;;  %v827_v56 = vmul.f32 %v2939_v6, %v3166_v40 }
 0x155   : > { %3721 = vst [vmem:[#allocation47_spill] sm:$0xff] %v3164_v16  ;;  %v3172_v44 = vld [vmem:[#allocation2 + $0x38] sm:$0xff]  ;;  %779 = vst.msk [vmem:[#allocation2 + $0x48] sm:$0xff] %vm759_vm1, %v758_v62  ;;  %v828_v25 = vmul.f32 %v2939_v6, %v3155_v39  ;;  %v892_v63 = vmul.f32 %v3050_v58, %v826_v60  ;;  %v3722_v22 = vrot.slane %v2951_v14, 1  ;;  %v915_v60 = vmul.f32 %v2930_v0, %v3155_v39 }
 0x156   : > { %v979_v34 = vsel %vm864_vm4, %v976_v27, %v978_v41  ;;  %v757_v11 = vmin.f32 %v749_v4, 6.0  ;;  %v830_v61 = vmul.f32 %v2939_v6, %v3172_v44  ;;  %v893_v47 = vmul.f32 %v3059_v59, %v827_v56 }
 0x157   : > { %v977_v57 = vsel %vm864_vm4, %v3722_v22, %v976_v27  ;;  %v1001_v51 = vadd.f32 %v979_v34, %v891_v1  ;;  %v3186_v62 = vld [vmem:[#allocation2 + $0x30] sm:$0xff]  ;;  %v894_v48 = vmul.f32 %v3091_v28, %v828_v25  ;;  %v917_v1 = vmul.f32 %v2930_v0, %v3172_v44 }
 0x158   : > { %778 = vst.msk [vmem:[#allocation2 + $0x40] sm:$0xff] %vm759_vm1, %v757_v11  ;;  %v829_v14 = vmul.f32 %v2939_v6, %v3186_v62  ;;  %v896_v27 = vmul.f32 %v3107_v30, %v830_v61  ;;  %v916_v4 = vmul.f32 %v2930_v0, %v3186_v62  ;;  %v962_v56 = vmul.f32 %v2920_v55, %v914_v7 }
 0x159   : > { %v963_v25 = vmul.f32 %v2936_v5, %v915_v60  ;;  %v1000_v22 = vadd.f32 %v977_v57, %v3029_v20  ;;  %v1015_v11 = vmul.f32 %v2934_v3, %v3166_v40  ;;  %v965_v61 = vmul.f32 %v3024_v13, %v917_v1 }
 0x15a   : > { %v895_v34 = vmul.f32 %v3099_v46, %v829_v14  ;;  %v964_v12 = vmul.f32 %v2942_v9, %v916_v4  ;;  %v1016_v26 = vmul.f32 %v2934_v3, %v3155_v39  ;;  %v980_v49 = vrot.slane %v962_v56, 1 }
 0x15b   : > { %v982_v16 = vrot.slane %v963_v25, 1  ;;  %v1017_v7 = vmul.f32 %v2934_v3, %v3186_v62  ;;  %v1018_v20 = vmul.f32 %v2934_v3, %v3172_v44  ;;  %v986_v8 = vrot.slane %v965_v61, 1 }
 0x15c   : > { %v3214_v57 = vld [vmem:[#allocation2 + $0x48] sm:$0xff]  ;;  %v984_v60 = vrot.slane %v964_v12, 1  ;;  %v1080_v14 = vmul.f32 %v3022_v10, %v3125_v45  ;;  %v1081_v4 = vmul.f32 %v3047_v29, %v1015_v11  ;;  %v981_v56 = vsel %vm864_vm4, %v978_v41, %v980_v49 }
 0x15d   : > { %v1020_v1 = vmul.f32 %v2934_v3, %v3214_v57  ;;  %v983_v25 = vsel %vm864_vm4, %v980_v49, %v982_v16  ;;  %v1082_v23 = vmul.f32 %v3056_v17, %v1016_v26  ;;  %v1002_v12 = vadd.f32 %v981_v56, %v892_v63 }
 0x15e   : > { %v985_v15 = vsel %vm864_vm4, %v982_v16, %v984_v60  ;;  %v987_v13 = vsel %vm864_vm4, %v984_v60, %v986_v8  ;;  %v1003_v61 = vadd.f32 %v983_v25, %v893_v47  ;;  %v1083_v11 = vmul.f32 %v3071_v2, %v1017_v7 }
 0x15f   : > { %v3226_v9 = vld [vmem:[#allocation2 + $0x40] sm:$0xff]  ;;  %v1004_v45 = vadd.f32 %v985_v15, %v894_v48  ;;  %v1005_v10 = vadd.f32 %v987_v13, %v895_v34  ;;  %v1084_v29 = vmul.f32 %v3096_v37, %v1018_v20  ;;  %v1086_v16 = vmul.f32 %v3009_v54, %v1020_v1 }
 0x160   : > { %v831_v41 = vmul.f32 %v2939_v6, %v3226_v9  ;;  %v918_v26 = vmul.f32 %v2930_v0, %v3226_v9  ;;  %v1019_v49 = vmul.f32 %v2934_v3, %v3226_v9  ;;  %v3723_v47 = vrot.slane %v3153_v36, 2 }
 0x161   : > { %v3724_v48 = vrot.slane %v2956_v18, 2  ;;  %v1100_v15 = vrot.slane %v1080_v14, 2  ;;  %v1102_v63 = vrot.slane %v1081_v4, 2  ;;  %v1104_v34 = vrot.slane %v1082_v23, 2 }
 0x162   : > { %v897_v7 = vmul.f32 %v3081_v21, %v831_v41  ;;  %v966_v6 = vmul.f32 %v3065_v31, %v918_v26  ;;  %v1085_v0 = vmul.f32 %v3040_v33, %v1019_v49  ;;  %v1106_v20 = vrot.slane %v1083_v11, 2 }
 0x163   : > { %v1099_v13 = vsel %vm1096_vm5, %v3724_v48, %v3723_v47  ;;  %v3725_v3 = vmov %v3723_v47  ;;  %v1103_v60 = vsel %vm1096_vm5, %v1100_v15, %v1102_v63  ;;  %v1105_v18 = vsel %vm1096_vm5, %v1102_v63, %v1104_v34 }
 0x164   : > { %v1101_v54 = vsel %vm1096_vm5, %v3725_v3, %v1100_v15  ;;  %v1108_v1 = vrot.slane %v1084_v29, 2  ;;  %v988_v56 = vrot.slane %v966_v6, 1  ;;  %v1107_v14 = vsel %vm1096_vm5, %v1104_v34, %v1106_v20 }
 0x165   : > { %v1110_v23 = vrot.slane %v1085_v0, 2  ;;  %v1112_v4 = vrot.slane %v1086_v16, 2  ;;  %v1124_v41 = vadd.f32 %v1099_v13, %v1000_v22  ;;  %v1125_v26 = vadd.f32 %v1101_v54, %v1001_v51 }
 0x166   : > { %v1109_v25 = vsel %vm1096_vm5, %v1106_v20, %v1108_v1  ;;  %v1126_v49 = vadd.f32 %v1103_v60, %v1002_v12  ;;  %v989_v11 = vsel %vm864_vm4, %v986_v8, %v988_v56  ;;  %v1007_v36 = vadd.f32 %v988_v56, %v897_v7 }
 0x167   : > { %v1111_v47 = vsel %vm1096_vm5, %v1108_v1, %v1110_v23  ;;  %v1113_v48 = vsel %vm1096_vm5, %v1110_v23, %v1112_v4  ;;  %v1006_v15 = vadd.f32 %v989_v11, %v896_v27  ;;  %v1127_v63 = vadd.f32 %v1105_v18, %v1003_v61 }
 0x168   : > { %v1128_v29 = vadd.f32 %v1107_v14, %v1004_v45  ;;  %v1129_v6 = vadd.f32 %v1109_v25, %v1005_v10  ;;  %v1131_v3 = vadd.f32 %v1113_v48, %v1007_v36  ;;  %v1139_v16 = vmul.f32 %v2959_v19, %v3166_v40 }
 0x169   : > { %v1140_v22 = vmul.f32 %v2959_v19, %v3155_v39  ;;  %v1141_v51 = vmul.f32 %v2959_v19, %v3186_v62  ;;  %v1130_v8 = vadd.f32 %v1111_v47, %v1006_v15  ;;  %v1142_v12 = vmul.f32 %v2959_v19, %v3172_v44  ;;  %v3727_v15 = vld [vmem:[#allocation28_spill] sm:$0xff] }
 0x16a   : > { %v1143_v27 = vmul.f32 %v2959_v19, %v3226_v9  ;;  %v1144_v10 = vmul.f32 %v2959_v19, %v3214_v57  ;;  %v1147_v61 = vmul.f32 %v3133_v38, %v3032_v52  ;;  %v1148_v45 = vmul.f32 %v1139_v16, %v3050_v58 }
 0x16b   : > { %v1149_v13 = vmul.f32 %v1140_v22, %v3059_v59  ;;  %v1150_v34 = vmul.f32 %v1141_v51, %v3091_v28  ;;  %v1151_v7 = vmul.f32 %v1142_v12, %v3099_v46  ;;  %v1155_v54 = vadd.f32 %v3158_v43, %v1124_v41  ;;  %v3729_v22 = vld [vmem:[#allocation45_spill] sm:$0xff] }
 0x16c   : > { %v1152_v0 = vmul.f32 %v1143_v27, %v3107_v30  ;;  %v1153_v20 = vmul.f32 %v1144_v10, %v3081_v21  ;;  %v1156_v60 = vadd.f32 %v1147_v61, %v1125_v26  ;;  %v1157_v18 = vadd.f32 %v1148_v45, %v1126_v49 }
 0x16d   : > { %v1158_v19 = vadd.f32 %v1149_v13, %v1127_v63  ;;  %v1159_v1 = vadd.f32 %v1150_v34, %v1128_v29  ;;  %v1160_v56 = vadd.f32 %v1151_v7, %v1129_v6  ;;  %v1169_v23 = vmul.f32 %v2982_v35, %v3166_v40  ;;  %v3728_v29 = vld [vmem:[#allocation38_spill] sm:$0xff] }
 0x16e   : > { %v1161_v38 = vadd.f32 %v1152_v0, %v1130_v8  ;;  %v1162_v14 = vadd.f32 %v1153_v20, %v1131_v3  ;;  %v1170_v4 = vmul.f32 %v2982_v35, %v3155_v39  ;;  %v1171_v25 = vmul.f32 %v2982_v35, %v3186_v62 }
 0x16f   : > { %v1172_v21 = vmul.f32 %v2982_v35, %v3172_v44  ;;  %v1173_v43 = vmul.f32 %v2982_v35, %v3226_v9  ;;  %v1174_v41 = vmul.f32 %v2982_v35, %v3214_v57  ;;  %v1176_v26 = vmul.f32 %v3137_v32, %v2912_v50  ;;  %v3730_v32 = vld [vmem:[#allocation31_spill] sm:$0xff] }
 0x170   : > { %v1177_v49 = vmul.f32 %v1169_v23, %v2918_v53  ;;  %v3726_v11 = vrot.slane %v3161_v24, 1  ;;  %v1178_v47 = vmul.f32 %v1170_v4, %v2920_v55  ;;  %v1179_v48 = vmul.f32 %v1171_v25, %v2936_v5 }
 0x171   : > { %v1180_v63 = vmul.f32 %v1172_v21, %v3727_v15  ;;  %v1181_v6 = vmul.f32 %v1173_v43, %v3728_v29  ;;  %v1182_v3 = vmul.f32 %v1174_v41, %v3065_v31  ;;  %v1192_v35 = vrot.slane %v1176_v26, 1 }
 0x172   : > { %v1215_v36 = vadd.f32 %v3726_v11, %v3044_v42  ;;  %v1194_v16 = vrot.slane %v1177_v49, 1  ;;  %v1229_v51 = vmul.f32 %v3730_v32, %v3729_v22  ;;  %v1196_v8 = vrot.slane %v1178_v47, 1 }
 0x173   : > { %v1198_v12 = vrot.slane %v1179_v48, 1  ;;  %v1200_v27 = vrot.slane %v1180_v63, 1  ;;  %v1202_v10 = vrot.slane %v1181_v6, 1  ;;  %v3731_v42 = vmov %v3726_v11 }
 0x174   : > { %v1193_v61 = vsel %vm864_vm4, %v3731_v42, %v1192_v35  ;;  %v1195_v45 = vsel %vm864_vm4, %v1192_v35, %v1194_v16  ;;  %v1204_v13 = vrot.slane %v1182_v3, 1  ;;  %v1230_v34 = vmul.f32 %v3730_v32, %v3166_v40  ;;  %v3735_v3 = vld [vmem:[#allocation47_spill] sm:$0xff] }
 0x175   : > { %v1197_v31 = vsel %vm864_vm4, %v1194_v16, %v1196_v8  ;;  %v1199_v7 = vsel %vm864_vm4, %v1196_v8, %v1198_v12  ;;  %v1201_v0 = vsel %vm864_vm4, %v1198_v12, %v1200_v27  ;;  %v1203_v20 = vsel %vm864_vm4, %v1200_v27, %v1202_v10 }
 0x176   : > { %v1205_v23 = vsel %vm864_vm4, %v1202_v10, %v1204_v13  ;;  %v1216_v4 = vadd.f32 %v1193_v61, %v1155_v54  ;;  %v1217_v24 = vadd.f32 %v1195_v45, %v1156_v60  ;;  %v1218_v25 = vadd.f32 %v1197_v31, %v1157_v18  ;;  %v3732_v60 = vld [vmem:[#allocation36_spill] sm:$0xff] }
 0x177   : > { %v1219_v21 = vadd.f32 %v1199_v7, %v1158_v19  ;;  %v1220_v43 = vadd.f32 %v1201_v0, %v1159_v1  ;;  %v1221_v41 = vadd.f32 %v1203_v20, %v1160_v56  ;;  %v1222_v26 = vadd.f32 %v1205_v23, %v1161_v38  ;;  %v3733_v19 = vld [vmem:[#allocation37_spill] sm:$0xff]  ;;  %v3734_v56 = vld [vmem:[#allocation39_spill] sm:$0xff] }
 0x178   : > { %v1223_v49 = vadd.f32 %v1204_v13, %v1162_v14  ;;  %v1231_v11 = vmul.f32 %v3730_v32, %v3155_v39  ;;  %v1232_v47 = vmul.f32 %v3730_v32, %v3186_v62  ;;  %v1233_v48 = vmul.f32 %v3730_v32, %v3172_v44 }
 0x179   : > { %v1234_v63 = vmul.f32 %v3730_v32, %v3226_v9  ;;  %v1235_v54 = vmul.f32 %v3730_v32, %v3214_v57  ;;  %v1238_v18 = vmul.f32 %v1229_v51, %v3732_v60  ;;  %v1239_v1 = vmul.f32 %v1230_v34, %v3733_v19 }
 0x17a   : > { %v1240_v38 = vmul.f32 %v1231_v11, %v3734_v56  ;;  %v1241_v14 = vmul.f32 %v1232_v47, %v3056_v17  ;;  %v1242_v6 = vmul.f32 %v1233_v48, %v3071_v2  ;;  %v1255_v35 = vrot.slane %v3735_v3, 2  ;;  %v3736_v11 = vld [vmem:[#allocation41_spill] sm:$0xff] }
 0x17b   : > { %v1243_v16 = vmul.f32 %v1234_v63, %v3096_v37  ;;  %v1244_v8 = vmul.f32 %v1235_v54, %v3040_v33  ;;  %v1256_v12 = vrot.slane %v1238_v18, 2  ;;  %v1258_v27 = vrot.slane %v1239_v1, 2 }
 0x17c   : > { %v1260_v10 = vrot.slane %v1240_v38, 2  ;;  %v1262_v32 = vrot.slane %v1241_v14, 2  ;;  %v1264_v42 = vrot.slane %v1242_v6, 2  ;;  %v1281_v51 = vadd.f32 %v1255_v35, %v1215_v36  ;;  %v3738_v6 = vld [vmem:[#allocation33_spill] sm:$0xff] }
 0x17d   : > { %v1257_v61 = vsel %vm1096_vm5, %v1255_v35, %v1256_v12  ;;  %v1259_v45 = vsel %vm1096_vm5, %v1256_v12, %v1258_v27  ;;  %v1266_v13 = vrot.slane %v1243_v16, 2  ;;  %v1268_v34 = vrot.slane %v1244_v8, 2 }
 0x17e   : > { %v1261_v31 = vsel %vm1096_vm5, %v1258_v27, %v1260_v10  ;;  %v1263_v7 = vsel %vm1096_vm5, %v1260_v10, %v1262_v32  ;;  %v1265_v0 = vsel %vm1096_vm5, %v1262_v32, %v1264_v42  ;;  %v1282_v20 = vadd.f32 %v1257_v61, %v1216_v4 }
 0x17f   : > { %v1267_v33 = vsel %vm1096_vm5, %v1264_v42, %v1266_v13  ;;  %v1269_v23 = vsel %vm1096_vm5, %v1266_v13, %v1268_v34  ;;  %v3737_v47 = vrot.slane %v3736_v11, 2  ;;  %v1283_v48 = vadd.f32 %v1259_v45, %v1217_v24  ;;  %v3742_v11 = vld [vmem:[#allocation43_spill] sm:$0xff] }
 0x180   : > { %v1284_v63 = vadd.f32 %v1261_v31, %v1218_v25  ;;  %v1285_v54 = vadd.f32 %v1263_v7, %v1219_v21  ;;  %v1286_v18 = vadd.f32 %v1265_v0, %v1220_v43  ;;  %v1287_v1 = vadd.f32 %v1267_v33, %v1221_v41  ;;  %v3739_v43 = vld [vmem:[#allocation30_spill] sm:$0xff] }
 0x181   : > { %v1271_v36 = vsel %vm1096_vm5, %v1268_v34, %v3737_v47  ;;  %v1288_v38 = vadd.f32 %v1269_v23, %v1222_v26  ;;  %v1295_v3 = vmul.f32 %v3738_v6, %v3729_v22  ;;  %v1296_v4 = vmul.f32 %v3738_v6, %v3166_v40  ;;  %v3740_v41 = vld [vmem:[#allocation46_spill] sm:$0xff] }
 0x182   : > { %v1289_v14 = vadd.f32 %v1271_v36, %v1223_v49  ;;  %v1297_v35 = vmul.f32 %v3738_v6, %v3155_v39  ;;  %v1298_v16 = vmul.f32 %v3738_v6, %v3186_v62  ;;  %v1299_v24 = vmul.f32 %v3738_v6, %v3172_v44  ;;  %v3741_v49 = vld [vmem:[#allocation35_spill] sm:$0xff]  ;;  %v3744_v36 = vld [vmem:[#allocation26_spill] sm:$0xff] }
 0x183   : > { %v1300_v25 = vmul.f32 %v3738_v6, %v3226_v9  ;;  %v1301_v21 = vmul.f32 %v3738_v6, %v3214_v57  ;;  %v1303_v26 = vmul.f32 %v3740_v41, %v3739_v43  ;;  %v1304_v8 = vmul.f32 %v1295_v3, %v3741_v49 }
 0x184   : > { %v1305_v12 = vmul.f32 %v1296_v4, %v3032_v52  ;;  %v1306_v27 = vmul.f32 %v1297_v35, %v3050_v58  ;;  %v1307_v10 = vmul.f32 %v1298_v16, %v3059_v59  ;;  %v1308_v32 = vmul.f32 %v1299_v24, %v3091_v28  ;;  %v3743_v58 = vld [vmem:[#allocation34_spill] sm:$0xff]  ;;  %v3747_v24 = vld [vmem:[#allocation32_spill] sm:$0xff] }
 0x185   : > { %v1309_v42 = vmul.f32 %v1300_v25, %v3099_v46  ;;  %v1310_v61 = vmul.f32 %v1301_v21, %v3107_v30  ;;  %v1312_v45 = vadd.f32 %v1303_v26, %v1281_v51  ;;  %v1313_v13 = vadd.f32 %v1304_v8, %v1282_v20 }
 0x186   : > { %v1314_v34 = vadd.f32 %v1305_v12, %v1283_v48  ;;  %v1315_v31 = vadd.f32 %v1306_v27, %v1284_v63  ;;  %v1316_v7 = vadd.f32 %v1307_v10, %v1285_v54  ;;  %v1317_v0 = vadd.f32 %v1308_v32, %v1286_v18  ;;  %v3745_v54 = vld [vmem:[#allocation42_spill] sm:$0xff] }
 0x187   : > { %v1318_v33 = vadd.f32 %v1309_v42, %v1287_v1  ;;  %v1319_v23 = vadd.f32 %v1310_v61, %v1288_v38  ;;  %v1320_v52 = vadd.f32 %v3742_v11, %v1289_v14  ;;  %v1325_v47 = vmul.f32 %v3743_v58, %v3729_v22 }
 0x188   : > { %v1326_v59 = vmul.f32 %v3743_v58, %v3166_v40  ;;  %v1327_v28 = vmul.f32 %v3743_v58, %v3155_v39  ;;  %v1328_v46 = vmul.f32 %v3743_v58, %v3186_v62  ;;  %v1329_v30 = vmul.f32 %v3743_v58, %v3172_v44 }
 0x189   : > { %v1330_v51 = vmul.f32 %v3743_v58, %v3226_v9  ;;  %v1331_v20 = vmul.f32 %v3743_v58, %v3214_v57  ;;  %v1333_v48 = vmul.f32 %v1325_v47, %v3744_v36  ;;  %v3746_v18 = vrot.slane %v3745_v54, 1 }
 0x18a   : > { %v1334_v63 = vmul.f32 %v1326_v59, %v2912_v50  ;;  %v1335_v38 = vmul.f32 %v1327_v28, %v2918_v53  ;;  %v1336_v14 = vmul.f32 %v1328_v46, %v2920_v55  ;;  %v1337_v6 = vmul.f32 %v1329_v30, %v2936_v5  ;;  %v2099_v30 = vld [vmem:[#allocation6] ss:$0 sm:$0xff] }
 0x18b   : > { %v1381_v1 = vadd.f32 %v3746_v18, %v1320_v52  ;;  %v1338_v3 = vmul.f32 %v1330_v51, %v3727_v15  ;;  %v1339_v4 = vmul.f32 %v1331_v20, %v3728_v29  ;;  %v1349_v35 = vrot.slane %v1333_v48, 1 }
 0x18c   : > { %v1350_v16 = vrot.slane %v1334_v63, 1  ;;  %v1386_v25 = vmul.f32 %v3747_v24, %v3729_v22  ;;  %v1352_v21 = vrot.slane %v1335_v38, 1  ;;  %v1354_v50 = vrot.slane %v1336_v14, 1 }
 0x18d   : > { %v1356_v43 = vrot.slane %v1337_v6, 1  ;;  %v1358_v41 = vrot.slane %v1338_v3, 1  ;;  %v1360_v53 = vrot.slane %v1339_v4, 1  ;;  %v1373_v49 = vadd.f32 %v1349_v35, %v1312_v45 }
 0x18e   : > { %v1351_v26 = vsel %vm864_vm4, %v1349_v35, %v1350_v16  ;;  %v1387_v55 = vmul.f32 %v3747_v24, %v3166_v40  ;;  %v1353_v5 = vsel %vm864_vm4, %v1350_v16, %v1352_v21  ;;  %v1355_v15 = vsel %vm864_vm4, %v1352_v21, %v1354_v50 }
 0x18f   : > { %v1357_v29 = vsel %vm864_vm4, %v1354_v50, %v1356_v43  ;;  %v1359_v8 = vsel %vm864_vm4, %v1356_v43, %v1358_v41  ;;  %v1361_v22 = vsel %vm864_vm4, %v1358_v41, %v1360_v53  ;;  %v3748_v12 = vmov %v3746_v18 }
 0x190   : > { %v1363_v27 = vsel %vm864_vm4, %v1360_v53, %v3748_v12  ;;  %v1374_v10 = vadd.f32 %v1351_v26, %v1313_v13  ;;  %v1375_v32 = vadd.f32 %v1353_v5, %v1314_v34  ;;  %v1376_v42 = vadd.f32 %v1355_v15, %v1315_v31  ;;  %v3749_v34 = vld [vmem:[#allocation29_spill] sm:$0xff] }
 0x191   : > { %v1377_v61 = vadd.f32 %v1357_v29, %v1316_v7  ;;  %v1378_v45 = vadd.f32 %v1359_v8, %v1317_v0  ;;  %v1379_v40 = vadd.f32 %v1361_v22, %v1318_v33  ;;  %v1380_v11 = vadd.f32 %v1363_v27, %v1319_v23 }
 0x192   : > { %v1388_v52 = vmul.f32 %v3747_v24, %v3155_v39  ;;  %v1389_v58 = vmul.f32 %v3747_v24, %v3186_v62  ;;  %v1390_v47 = vmul.f32 %v3747_v24, %v3172_v44  ;;  %v1391_v59 = vmul.f32 %v3747_v24, %v3226_v9  ;;  %v3750_v62 = vld [vmem:[#allocation44_spill] sm:$0xff] }
 0x193   : > { %v1392_v13 = vmul.f32 %v3747_v24, %v3214_v57  ;;  %v1395_v31 = vmul.f32 %v1386_v25, %v3749_v34  ;;  %v1396_v7 = vmul.f32 %v1387_v55, %v3732_v60  ;;  %v1447_v23 = vadd.f32 %v3750_v62, %v1381_v1  ;;  %v3751_v1 = vld [vmem:[#allocation40_spill] sm:$0xff]  ;;  %v2100_v24 = vld [vmem:[#allocation8] ss:$0 sm:$0xff] }
 0x194   : > { %v1397_v0 = vmul.f32 %v1388_v52, %v3733_v19  ;;  %v1398_v39 = vmul.f32 %v1389_v58, %v3734_v56  ;;  %v1399_v33 = vmul.f32 %v1390_v47, %v3056_v17  ;;  %v1400_v44 = vmul.f32 %v1391_v59, %v3071_v2 }
 0x195   : > { %v1401_v28 = vmul.f32 %v1392_v13, %v3096_v37  ;;  %v1413_v9 = vrot.slane %v1395_v31, 2  ;;  %v1414_v46 = vrot.slane %v1396_v7, 2  ;;  %v1463_v36 = vmul.f32 %v2099_v30, %v1447_v23 }
 0x196   : > { %v1416_v57 = vrot.slane %v1397_v0, 2  ;;  %v1418_v51 = vrot.slane %v1398_v39, 2  ;;  %v1420_v20 = vrot.slane %v1399_v33, 2  ;;  %v1422_v19 = vrot.slane %v1400_v44, 2 }
 0x197   : > { %v1415_v60 = vsel %vm1096_vm5, %v1413_v9, %v1414_v46  ;;  %v1424_v48 = vrot.slane %v1401_v28, 2  ;;  %v1439_v56 = vadd.f32 %v1413_v9, %v1373_v49  ;;  %v3752_v38 = vrot.slane %v3751_v1, 2 }
 0x198   : > { %v1417_v17 = vsel %vm1096_vm5, %v1414_v46, %v1416_v57  ;;  %v1419_v63 = vsel %vm1096_vm5, %v1416_v57, %v1418_v51  ;;  %v1421_v2 = vsel %vm1096_vm5, %v1418_v51, %v1420_v20  ;;  %v1440_v54 = vadd.f32 %v1415_v60, %v1374_v10 }
 0x199   : > { %v1423_v37 = vsel %vm1096_vm5, %v1420_v20, %v1422_v19  ;;  %v1425_v18 = vsel %vm1096_vm5, %v1422_v19, %v1424_v48  ;;  %v1427_v14 = vsel %vm1096_vm5, %v1424_v48, %v3752_v38  ;;  %v1441_v6 = vadd.f32 %v1417_v17, %v1375_v32 }
 0x19a   : > { %v1442_v3 = vadd.f32 %v1419_v63, %v1376_v42  ;;  %v1443_v4 = vadd.f32 %v1421_v2, %v1377_v61  ;;  %v1444_v35 = vadd.f32 %v1423_v37, %v1378_v45  ;;  %v1445_v16 = vadd.f32 %v1425_v18, %v1379_v40 }
 0x19b   : > { %v1446_v25 = vadd.f32 %v1427_v14, %v1380_v11  ;;  %v1455_v21 = vmul.f32 %v2099_v30, %v1439_v56  ;;  %v1456_v50 = vmul.f32 %v2099_v30, %v1440_v54  ;;  %v1457_v43 = vmul.f32 %v2099_v30, %v1441_v6 }
 0x19c   : > { %v1458_v41 = vmul.f32 %v2099_v30, %v1442_v3  ;;  %v1459_v26 = vmul.f32 %v2099_v30, %v1443_v4  ;;  %v1460_v53 = vmul.f32 %v2099_v30, %v1444_v35  ;;  %v1461_v49 = vmul.f32 %v2099_v30, %v1445_v16 }
 0x19d   : > { %v1462_v55 = vmul.f32 %v2099_v30, %v1446_v25  ;;  %v1471_v5 = vadd.f32 %v2100_v24, %v1455_v21  ;;  %v1472_v15 = vadd.f32 %v2100_v24, %v1456_v50  ;;  %v1473_v29 = vadd.f32 %v2100_v24, %v1457_v43 }
 0x19e   : > { %v1474_v8 = vadd.f32 %v2100_v24, %v1458_v41  ;;  %v1475_v22 = vadd.f32 %v2100_v24, %v1459_v26  ;;  %v1476_v12 = vadd.f32 %v2100_v24, %v1460_v53  ;;  %v1477_v27 = vadd.f32 %v2100_v24, %v1461_v49 }
 0x19f   : > { %v1478_v10 = vadd.f32 %v2100_v24, %v1462_v55  ;;  %v1479_v32 = vadd.f32 %v2100_v24, %v1463_v36  ;;  %v1480_v42 = vmax.f32 %v1471_v5, 0.0  ;;  %v1481_v61 = vmax.f32 %v1472_v15, 0.0 }
 0x1a0   : > { %v1482_v45 = vmax.f32 %v1473_v29, 0.0  ;;  %v1483_v40 = vmax.f32 %v1474_v8, 0.0  ;;  %v1484_v11 = vmax.f32 %v1475_v22, 0.0  ;;  %v1485_v52 = vmax.f32 %v1476_v12, 0.0  ;;  %v1639_v8 = vld [vmem:[%s3627_s10 + $0x8] sm:$0xff]  ;;  %v1638_v22 = vld [vmem:[%s3627_s10] sm:$0xff] }
 0x1a1   : > { %v1486_v58 = vmax.f32 %v1477_v27, 0.0  ;;  %v1487_v47 = vmax.f32 %v1478_v10, 0.0  ;;  %v3427_v59 = vmin.f32 %v1480_v42, 6.0  ;;  %v3429_v13 = vmin.f32 %v1481_v61, 6.0  ;;  %v1563_v12 = vld [vmem:[%s3626_s9] sm:$0x1] }
 0x1a2   : > { %v3431_v34 = vmin.f32 %v1482_v45, 6.0  ;;  %v3433_v31 = vmin.f32 %v1483_v40, 6.0  ;;  %v3435_v7 = vmin.f32 %v1484_v11, 6.0  ;;  %v1488_v0 = vmax.f32 %v1479_v32, 0.0  ;;  %v1740_v61 = vld [vmem:[%s3629_s12 + $0x38] sm:$0xff]  ;;  %v1739_v45 = vld [vmem:[%s3629_s12 + $0x30] sm:$0xff] }
 0x1a3   : > { %v3437_v39 = vmin.f32 %v1485_v52, 6.0  ;;  %v3439_v33 = vmin.f32 %v1486_v58, 6.0  ;;  %v1507_v62 = vrot.slane %v3427_v59, 7  ;;  %v1508_v23 = vrot.slane %v3429_v13, 7  ;;  %2201 = vmatprep.subr.mxu1 %v1740_v61  ;;  %v1738_v40 = vld [vmem:[%s3629_s12 + $0x28] sm:$0xff]  ;;  %v1737_v11 = vld [vmem:[%s3629_s12 + $0x20] sm:$0xff] }
 0x1a4   : > { %v1510_v44 = vrot.slane %v3431_v34, 7  ;;  %v1512_v28 = vrot.slane %v3433_v31, 7  ;;  %v3445_v9 = vmin.f32 %v1487_v47, 6.0  ;;  %v1514_v46 = vrot.slane %v3435_v7, 7  ;;  %2202 = vmatpush3.msra.mxu1 %v1740_v61  ;;  %v1736_v52 = vld [vmem:[%s3629_s12 + $0x18] sm:$0xff]  ;;  %v1735_v58 = vld [vmem:[%s3629_s12 + $0x10] sm:$0xff] }
 0x1a5   : > { %v1516_v30 = vrot.slane %v3437_v39, 7  ;;  %v1509_v57 = vsel %vm1053_vm3, %v1507_v62, %v1508_v23  ;;  %v3452_v36 = vmin.f32 %v1488_v0, 6.0  ;;  %v1518_v60 = vrot.slane %v3439_v33, 7  ;;  %2203 = vmatprep.subr.mxu1 %v1739_v45  ;;  %v1734_v47 = vld [vmem:[%s3629_s12 + $0x8] sm:$0xff]  ;;  %v1733_v0 = vld [vmem:[%s3629_s12] sm:$0xff] }
 0x1a6   : > { %v1511_v51 = vsel %vm1053_vm3, %v1508_v23, %v1510_v44  ;;  %v1513_v20 = vsel %vm1053_vm3, %v1510_v44, %v1512_v28  ;;  %v1532_v19 = vsel %vm759_vm1, %v1509_v57, 0.0  ;;  %v1515_v17 = vsel %vm1053_vm3, %v1512_v28, %v1514_v46  ;;  %2204 = vmatpush3.msra.mxu1 %v1739_v45  ;;  %v1640_v62 = vld [vmem:[%s3628_s11] sm:$0x1] }
 0x1a7   : > { %v1533_v48 = vsel %vm759_vm1, %v1511_v51, 0.0  ;;  %v1535_v56 = vsel %vm759_vm1, %v1513_v20, 0.0  ;;  %v1517_v63 = vsel %vm1053_vm3, %v1514_v46, %v1516_v30  ;;  %v1520_v2 = vrot.slane %v3445_v9, 7  ;;  %2205 = vmatprep.subr.mxu1 %v1738_v40  ;;  %v3754_v20 = vld [vmem:[#allocation27_spill] sm:$0xff] }
 0x1a8   : > { %v1534_v54 = vadd.f32 %v1533_v48, %v1532_v19  ;;  %v1537_v18 = vsel %vm759_vm1, %v1515_v17, 0.0  ;;  %v1539_v1 = vsel %vm759_vm1, %v1517_v63, 0.0  ;;  %v1519_v38 = vsel %vm1053_vm3, %v1516_v30, %v1518_v60  ;;  %2206 = vmatpush3.msra.mxu1 %v1738_v40 }
 0x1a9   : > { %v1521_v14 = vsel %vm1053_vm3, %v1518_v60, %v1520_v2  ;;  %v1522_v6 = vrot.slane %v3452_v36, 7  ;;  %v1541_v35 = vsel %vm759_vm1, %v1519_v38, 0.0  ;;  %v3753_v29 = vmov 0.0   ;;  %2207 = vmatprep.subr.mxu1 %v1737_v11 }
 0x1aa   : > { %v1536_v37 = vadd.f32 %v1535_v56, %v1534_v54  ;;  %v1543_v16 = vsel %vm759_vm1, %v1521_v14, 0.0  ;;  %2208 = vmatpush3.msra.mxu1 %v1737_v11  ;;  %v2347_v11 = vld [vmem:[%s2821_s20 + $0x10] sm:$0xff] }
 0x1ab   : > { %v1523_v24 = vsel %vm1053_vm3, %v1520_v2, %v1522_v6  ;;  %2209 = vmatprep.subr.mxu1 %v1736_v52 }
 0x1ac   : > { %v1538_v3 = vadd.f32 %v1537_v18, %v1536_v37  ;;  %v1545_v50 = vsel %vm759_vm1, %v1523_v24, 0.0  ;;  %2210 = vmatpush3.msra.mxu1 %v1736_v52  ;;  %v2112_v24 = vld [vmem:[#allocation11] ss:$0 sm:$0xff] }
 0x1ad   : > { %2211 = vmatprep.subr.mxu1 %v1735_v58 }
 0x1ae   : > { %v1540_v4 = vadd.f32 %v1539_v1, %v1538_v3  ;;  %2212 = vmatpush3.msra.mxu1 %v1735_v58 }
 0x1af   : > { %2213 = vmatprep.subr.mxu1 %v1734_v47 }
 0x1b0   : > { %v1542_v25 = vadd.f32 %v1541_v35, %v1540_v4  ;;  %2214 = vmatpush3.msra.mxu1 %v1734_v47 }
 0x1b1   : > { %2215 = vmatprep.subr.mxu1 %v1733_v0 }
 0x1b2   : > { %v1544_v21 = vadd.f32 %v1543_v16, %v1542_v25  ;;  %2216 = vmatpush3.msra.mxu1 %v1733_v0 }
 0x1b4   : > { %v1546_v43 = vadd.f32 %v1545_v50, %v1544_v21  ;;  %v2113_v21 = vld [vmem:[#allocation12] ss:$0 sm:$0xff] }
 0x1b6   : > { %v1547_v41 = vrot.slane %v1546_v43, 4 }
 0x1b8   : > { %v1548_v26 = vadd.f32 %v1547_v41, %v1546_v43 }
 0x1ba   : > { %v1549_v53 = vrot.slane %v1548_v26, 2 }
 0x1bc   : > { %v1550_v49 = vadd.f32 %v1549_v53, %v1548_v26 }
 0x1be   : > { %v1551_v55 = vrot.slane %v1550_v49, 1 }
 0x1c0   : > { %v1552_v5 = vadd.f32 %v1551_v55, %v1550_v49  ;;  %v2344_v49 = vld [vmem:[%s2821_s20 + $0x8] sm:$0xff] }
 0x1c2   : > { %v1554_v15 = vmul.f32 0.015625, %v1552_v5 }
 0x1c4   : > { %2192 = vmatmul.mubr.msk.f32.vlgmr.msra.gmra.mxu0 %vm759_vm1, %v1554_v15 }
 0x1c5   : > { %2198 = vmatprep.mubr.msk.f32.mxu0 %vm2598_vm2, %v3753_v29  ;;  %2195 = vmatpush3.msra.mxu0 %v1639_v8  ;;  %v2345_v8 = vld [vmem:[%s2821_s20] sm:$0xff] }
 0x1c6   : > { %2196 = vmatprep.subr.mxu0 %v3753_v29 }
 0x1c7   : > { %2197 = vmatpush3.msra.mxu0 %v1638_v22 }
 0x284   : > { %v1633_v27 = vpop.f32.mrf.mxu0 }
 0x285   : > { %v1634_v10 = vadd.f32 %v1633_v27, %v1563_v12 }
 0x286   : > { %v2193_v32 = vpop.f32.mrf.mxu0 }
 0x287   : > { %v1637_v42 = vmax.f32 %v1634_v10, 0.0  ;;  %v2346_v32 = vld [vmem:[%s2821_s20 + $0x18] sm:$0xff] }
 0x289   : > { %2199 = vmatmul.mubr.msk.f32.vlgmr.msra.gmra.mxu0 %vm583_vm0, %v1637_v42 }
 0x349   : > { %v1710_v23 = vpop.f32.mrf.mxu0 }
 0x34a   : > { %v1711_v44 = vadd.f32 %v1710_v23, %v1640_v62  ;;  %v2348_v62 = vld [vmem:[%s2821_s20 + $0x28] sm:$0xff] }
 0x34b   : > { %v2200_v28 = vpop.f32.mrf.mxu0 }
 0x34c   : > { %v2103_v46 = vmul.f32 -1.442695, %v1711_v44 }
 0x34e   : > { %2340 = vpow2.f32 %v2103_v46 }
 0x35b   : > { %v2341_v30 = vpop.eup %2340 }
 0x35c   : > { %v1717_v57 = vadd.f32 1.0, %v2341_v30  ;;  %v2349_v30 = vld [vmem:[%s2821_s20 + $0x20] sm:$0xff] }
 0x35e   : > { %2342 = vrcp.f32 %v1717_v57 }
 0x36b   : > { %v2343_v51 = vpop.eup %2342 }
 0x36c   : > { %v1723_v60 = vrot.slane %v2343_v51, %v3754_v20 }
 0x36e   : > { %v1724_v19 = vmul.f32 %v1723_v60, %v3427_v59  ;;  %v1725_v48 = vmul.f32 %v1723_v60, %v3429_v13  ;;  %v1726_v56 = vmul.f32 %v1723_v60, %v3431_v34  ;;  %v1727_v17 = vmul.f32 %v1723_v60, %v3433_v31 }
 0x36f   : > { %v1728_v63 = vmul.f32 %v1723_v60, %v3435_v7  ;;  %v1729_v2 = vmul.f32 %v1723_v60, %v3437_v39  ;;  %v1730_v13 = vmul.f32 %v1723_v60, %v3439_v33  ;;  %v1731_v7 = vmul.f32 %v1723_v60, %v3445_v9 }
 0x370   : > { %v1750_v54 = vrot.slane %v1724_v19, 7  ;;  %v1751_v37 = vrot.slane %v1725_v48, 7  ;;  %v1753_v18 = vrot.slane %v1726_v56, 7  ;;  %v1755_v1 = vrot.slane %v1727_v17, 7  ;;  %v2351_v56 = vld [vmem:[%s2821_s20 + $0x30] sm:$0xff] }
 0x371   : > { %v1757_v59 = vrot.slane %v1728_v63, 7  ;;  %v1759_v31 = vrot.slane %v1729_v2, 7  ;;  %v1761_v6 = vrot.slane %v1730_v13, 7  ;;  %v1732_v3 = vmul.f32 %v1723_v60, %v3452_v36  ;;  %v2350_v60 = vld [vmem:[%s2821_s20 + $0x38] sm:$0xff] }
 0x372   : > { %v1752_v38 = vsel %vm1053_vm3, %v1750_v54, %v1751_v37  ;;  %v1754_v14 = vsel %vm1053_vm3, %v1751_v37, %v1753_v18  ;;  %v1756_v34 = vsel %vm1053_vm3, %v1753_v18, %v1755_v1  ;;  %v1763_v4 = vrot.slane %v1731_v7, 7 }
 0x373   : > { %2217 = vmatprep.mubr.msk.f32.mxu1 %vm759_vm1, %v1752_v38  ;;  %v1758_v39 = vsel %vm1053_vm3, %v1755_v1, %v1757_v59  ;;  %v1760_v33 = vsel %vm1053_vm3, %v1757_v59, %v1759_v31  ;;  %v1762_v35 = vsel %vm1053_vm3, %v1759_v31, %v1761_v6  ;;  %v1765_v16 = vrot.slane %v1732_v3, 7 }
 0x374   : > { %2218 = vmatmul.mubr.msk.f32.vlgmr.msra.gmra.mxu1 %vm759_vm1, %v1754_v14  ;;  %v1764_v9 = vsel %vm1053_vm3, %v1761_v6, %v1763_v4 }
 0x375   : > { %2220 = vmatprep.mubr.msk.f32.mxu1 %vm759_vm1, %v1756_v34  ;;  %v1766_v36 = vsel %vm1053_vm3, %v1763_v4, %v1765_v16 }
 0x378   : > { %2221 = vmatmul.mubr.msk.f32.gmra.mxu1 %vm759_vm1, %v1758_v39 }
 0x379   : > { %2223 = vmatprep.mubr.msk.f32.mxu1 %vm759_vm1, %v1760_v33 }
 0x37c   : > { %2224 = vmatmul.mubr.msk.f32.gmra.mxu1 %vm759_vm1, %v1762_v35 }
 0x37d   : > { %2226 = vmatprep.mubr.msk.f32.mxu1 %vm759_vm1, %v1764_v9 }
 0x380   : > { %2227 = vmatmul.mubr.msk.f32.gmra.mxu1 %vm759_vm1, %v1766_v36 }
 0x434   : > { %v2219_v25 = vpop.f32.mrf.mxu1 }
 0x435   : > { %v1896_v50 = vmul.f32 %v2219_v25, %v2112_v24 }
 0x436   : > { %v1849_v43 = vpop.f32.mrf.mxu1 }
 0x437   : > { %v1911_v41 = vadd.f32 %v2113_v21, %v1896_v50  ;;  %v1895_v26 = vmul.f32 %v2112_v24, %v1849_v43 }
 0x438   : > { %v2222_v53 = vpop.f32.mrf.mxu1 }
 0x439   : > { %v1919_v55 = vadd.f32 %v2344_v49, %v1911_v41  ;;  %v1910_v5 = vadd.f32 %v2113_v21, %v1895_v26  ;;  %v1898_v15 = vmul.f32 %v2222_v53, %v2112_v24 }
 0x43a   : > { %v1859_v29 = vpop.f32.mrf.mxu1 }
 0x43b   : > { %1927 = vst.msk [vmem:[%s3541_s26 + $0x8] sm:$0xff] %vm583_vm0, %v1919_v55  ;;  %v1918_v22 = vadd.f32 %v2345_v8, %v1910_v5  ;;  %v1913_v12 = vadd.f32 %v2113_v21, %v1898_v15  ;;  %v1897_v27 = vmul.f32 %v2112_v24, %v1859_v29 }
 0x43c   : > { %v2225_v10 = vpop.f32.mrf.mxu1 }
 0x43d   : > { %1926 = vst.msk [vmem:[%s3541_s26] sm:$0xff] %vm583_vm0, %v1918_v22  ;;  %v1921_v42 = vadd.f32 %v2346_v32, %v1913_v12  ;;  %v1912_v61 = vadd.f32 %v2113_v21, %v1897_v27  ;;  %v1900_v45 = vmul.f32 %v2225_v10, %v2112_v24 }
 0x43e   : > { %v1869_v40 = vpop.f32.mrf.mxu1 }
 0x43f   : > { %1929 = vst.msk [vmem:[%s3541_s26 + $0x18] sm:$0xff] %vm583_vm0, %v1921_v42  ;;  %v1920_v52 = vadd.f32 %v2347_v11, %v1912_v61  ;;  %v1915_v58 = vadd.f32 %v2113_v21, %v1900_v45  ;;  %v1899_v47 = vmul.f32 %v2112_v24, %v1869_v40 }
 0x440   : > { %v2228_v0 = vpop.f32.mrf.mxu1 }
 0x441   : > { %1928 = vst.msk [vmem:[%s3541_s26 + $0x10] sm:$0xff] %vm583_vm0, %v1920_v52  ;;  %v1923_v23 = vadd.f32 %v2348_v62, %v1915_v58  ;;  %v1914_v44 = vadd.f32 %v2113_v21, %v1899_v47  ;;  %v1902_v28 = vmul.f32 %v2228_v0, %v2112_v24 }
 0x442   : > { %v1879_v46 = vpop.f32.mrf.mxu1 }
 0x443   : > { %1931 = vst.msk [vmem:[%s3541_s26 + $0x28] sm:$0xff] %vm583_vm0, %v1923_v23  ;;  %v1922_v57 = vadd.f32 %v2349_v30, %v1914_v44  ;;  %v1917_v51 = vadd.f32 %v2113_v21, %v1902_v28  ;;  %v1901_v20 = vmul.f32 %v2112_v24, %v1879_v46 }
 0x445   : > { %1930 = vst.msk [vmem:[%s3541_s26 + $0x20] sm:$0xff] %vm583_vm0, %v1922_v57  ;;  %v1925_v19 = vadd.f32 %v2350_v60, %v1917_v51  ;;  %v1916_v48 = vadd.f32 %v2113_v21, %v1901_v20 }
 0x447   : > { %1933 = vst.msk [vmem:[%s3541_s26 + $0x38] sm:$0xff] %vm583_vm0, %v1925_v19  ;;  %v1924_v17 = vadd.f32 %v2351_v56, %v1916_v48 }
 0x449   : > { %1932 = vst.msk [vmem:[%s3541_s26 + $0x30] sm:$0xff] %vm583_vm0, %v1924_v17 }
 0x44a   : > { %2521 = shalt.err (!%p2518_p2)
}
 0x44b   : > { %s2522_s20 = scalar_lea.hbm %s3566_s29, 1024  ;;  %s2526_s26 = scalar_lea.hbm %s3755_s16, 2048 }
 0x44c   : > { %p2523_p4 = scmp.ne.s32.totalorder %s3566_s29, %s2522_s20  ;;  %p2527_p10 = scmp.lt.s32.totalorder %s3566_s29, %s3755_s16 }
 0x44d   : > { %p2528_p7 = scmp.lt.s32.totalorder %s2526_s26, %s2522_s20 }
 0x44e   : > { %p2524_p8 = pnand %p2523_p4, %p3756_p9 }
 0x44f   : > { %p2529_p11 = por %p2528_p7, %p2527_p10 }
 0x450   : > { %p2525_p12 = pneg %p2524_p8 }
 0x452   : > { %p2530_p0 = pnand %p2529_p11, %p2525_p12 }
 0x454   : > { %2533 = shalt.err (!%p2530_p0)
}
 0x455   : > { %s2600_s25 = smov 128   ;;  %s2601_s27 = smov 8  }
 0x456   : > { %2253 = dma.vmem_to_hbm [thread:$0]  (%p3756_p9), %s3568_s21, 1024, %s3566_s29, %s3577_s22, %s2600_s25, %s2600_s25, %s2601_s27  }
 0x457 PF: > { %s3757_s17 = sld [smem:[#allocation22_spill]] }
 0x458   : > { %s3758_s15 = sld [smem:[#allocation20_spill]] }
 0x459   : > { %s3759_s5 = sld [smem:[#allocation25_spill]] }
 0x45d   : > { %p2290_p6 = scmp.ge.s32.totalorder %s3757_s17, 2 }
 0x45e   : > { %s1963_s24 = sand.u32 1, %s3758_s15  }
 0x45f   : > { %p3760_p5 = scmp.ne.s32.totalorder %s3759_s5, 0  ;;  %s1964_s20 = scalar_lea.sflag [#allocation5], %s1963_s24 }
 0x461   : > { %p2275_p1 = pnand %p2290_p6, %p3760_p5 }
 0x463   : > { %p2276_p3 = pneg %p2275_p1 }
 0x465   : > { %2567 = dma.done.wait (%p2276_p3), %s1964_s20, 1024  }
 0x466   : > { %2569 = vsyncadd (%p2276_p3), %s1964_s20, 4294966272  ;;  %s3761_s21 = sld [smem:[#allocation23_spill]]  ;;  %s3764_s18 = smov %s2576_s19 }
 0x467   : > { %s3762_s30 = sld [smem:[#allocation21_spill]] }
 0x468   : > { %s3763_s20 = sld [smem:[#allocation24_spill]] }
 0x46c   : > { %p29_p13 = scmp.ge.s32.totalorder %s3761_s21, 4  }
 0x46d   : > { %s3765_s19 = smov %s3762_s30 }
 0x46e   :  { %31 = sbr.rel (!%p29_p13) target bundleno = 10 (0xa), region = 140 }
 0x473   :  { %1969 = vsyncpa [#allocation4], 1 }
 0x474   :  { %1971 = vsyncpa [#allocation4 + $0x1], 1 }
 0x475   :  { %1972 = vsyncpa [#allocation7], 1 }
 0x476   :  { %1973 = vsyncpa [#allocation10], 1 }
 0x477   :  { %1974 = vsyncpa [#allocation13], 1 }
 0x478   :  { %1975 = vsyncpa [#allocation5], 1 }
 0x479   :  { %1977 = vsyncpa [#allocation5 + $0x1], 1 }

</bundles_post_ra>
